<compile_context>
chip_gen: v6e
topology: v6e:2x2x1
jax: 0.10.0
libtpu: 0.0.40
codegen_flags: <defaults>
</compile_context>

<pallas_src>
import jax
import jax.numpy as jnp
from jax import lax
from jax.experimental import pallas as pl
from jax.experimental.pallas import tpu as pltpu


def _ceil_to(x, m):
    return ((x + m - 1) // m) * m


def critic_kernel(x_ref, w1_ref, b1_ref, w2_ref, b2_ref, w3_ref, b3_ref,
                  out_ref):
    compute_dtype = w1_ref.dtype            # bf16 fast path or f32
    x = x_ref[...].astype(compute_dtype)    # (T, D): cast in-kernel, no wrapper pass

    # fc1: contract on D directly (W1 @ x^T without materializing x^T):
    # (H1, D) x (T, D) -> (H1, T); MXU matmul with f32 accumulation.
    h1 = lax.dot_general(w1_ref[...], x,
                         dimension_numbers=(((1,), (1,)), ((), ())),
                         preferred_element_type=jnp.float32)
    h1 = jnp.maximum(h1 + b1_ref[...], 0.0)          # bias (H1,1) lane-broadcast

    # fc2: (H2, H1) @ (H1, T) -> (H2, T); h1 fed straight from vregs
    # (no explicit VMEM staging buffer), f32 accumulation.
    h2 = jnp.dot(w2_ref[...], h1.astype(compute_dtype),
                 preferred_element_type=jnp.float32)
    h2 = jnp.maximum(h2 + b2_ref[...], 0.0)

    # Value head: kept OFF the MXU.  VPU multiply + sublane reduction lands
    # directly in a lane-major (1, T) row -> single lane-dense store.
    v = jnp.sum(h2 * w3_ref[...], axis=0, keepdims=True) + b3_ref[...]
    out_ref[...] = v.astype(out_ref.dtype)


def _choose_batch_tile(B):
    if B < 128:
        # Single full-array tile (block == full lane extent, legal layout).
        return _ceil_to(max(B, 8), 8)
    if B < 256:
        # Two 128-lane tiles: lane-dense stores + work for both v7x TCs.
        return 128
    # Large B: big lane-dense N tiles for MXU fill, but keep >= 2 grid steps
    # so the "parallel" axis can shard across v7x's two TensorCores.
    return max(128, min(1024, ((B // 2) // 128) * 128))


def prepare_critic_params(params, *, use_bf16=True):
    """One-time (per weight update) layout/dtype prep — hoisted out of the
    per-forward-call path.  Input: PyTorch-style (w (out,in), b (out,))."""
    w1, b1, w2, b2, w3, b3 = params
    cd = jnp.bfloat16 if use_bf16 else jnp.float32
    return (
        w1.astype(cd),                              # (512, D)   MXU operand
        b1.reshape(-1, 1).astype(jnp.float32),      # (512, 1)   column bias
        w2.astype(cd),                              # (256, 512) MXU operand
        b2.reshape(-1, 1).astype(jnp.float32),      # (256, 1)
        w3.reshape(-1, 1).astype(jnp.float32),      # (256, 1)   value-head column
        b3.reshape(1, 1).astype(jnp.float32),       # (1, 1)
    )


def critic_forward(x, kernel_params, *, batch_tile=None):
    """x: (B, state_dim) float32 -> (B, 1) float32.

    kernel_params: output of prepare_critic_params (weights already in the
    compute dtype, biases as (out,1) columns)."""
    w1, b1, w2, b2, w3_col, b3 = kernel_params
    B, D = x.shape
    H1 = w1.shape[0]          # 512
    H2 = w2.shape[0]          # 256

    if batch_tile is None:
        batch_tile = _choose_batch_tile(B)
    num_tiles = pl.cdiv(B, batch_tile)
    B_pad = num_tiles * batch_tile            # all output writes in-bounds

    # Advisory cost hint so XLA schedules surrounding PPO ops correctly.
    flops = 2 * B * (D * H1 + H1 * H2 + H2)
    bytes_accessed = (
        x.size * x.dtype.itemsize
        + sum(int(p.size) * p.dtype.itemsize for p in kernel_params)
        + B_pad * 4
    )
    cost = pl.CostEstimate(flops=flops, transcendentals=0,
                           bytes_accessed=bytes_accessed)

    out = pl.pallas_call(
        critic_kernel,
        out_shape=jax.ShapeDtypeStruct((1, B_pad), jnp.float32),
        grid_spec=pltpu.PrefetchScalarGridSpec(
            num_scalar_prefetch=0,
            grid=(num_tiles,),
            in_specs=[
                # x streamed in its NATIVE (B, D) layout; partial last block
                # (when batch_tile doesn't divide B) reads padded garbage that
                # only ever reaches output lanes we slice off below.
                pl.BlockSpec((batch_tile, D), lambda i: (i, 0)),
                # Constant index_maps -> weights/biases stay resident in VMEM
                # across grid steps (no per-step re-DMA from HBM).
                pl.BlockSpec((H1, D), lambda i: (0, 0)),           # W1 (out,in)
                pl.BlockSpec((H1, 1), lambda i: (0, 0)),           # b1
                pl.BlockSpec((H2, H1), lambda i: (0, 0)),          # W2
                pl.BlockSpec((H2, 1), lambda i: (0, 0)),           # b2
                pl.BlockSpec((H2, 1), lambda i: (0, 0)),           # w3 (column)
                pl.BlockSpec((1, 1), lambda i: (0, 0)),            # b3
            ],
            # Lane-dense output slab: each grid step writes one unmasked
            # (1, batch_tile) row.
            out_specs=pl.BlockSpec((1, batch_tile), lambda i: (0, i)),
        ),
        compiler_params=pltpu.CompilerParams(
            dimension_semantics=("parallel",),
        ),
        cost_estimate=cost,
    )(x, w1, b1, w2, b2, w3_col, b3)

    return out[0, :B].reshape(B, 1)


def init_critic_params(key, state_dim):
    """Deterministic synthetic init, PyTorch nn.Linear default style and
    PyTorch-native shapes: w (out_features, in_features), b (out_features,)."""
    ks = jax.random.split(key, 6)

    def linear_init(kw, kb, fan_in, fan_out):
        bound = 1.0 / jnp.sqrt(jnp.float32(fan_in))
        w = jax.random.uniform(kw, (fan_out, fan_in), jnp.float32, -bound, bound)
        b = jax.random.uniform(kb, (fan_out,), jnp.float32, -bound, bound)
        return w, b

    w1, b1 = linear_init(ks[0], ks[1], state_dim, 512)
    w2, b2 = linear_init(ks[2], ks[3], 512, 256)
    w3, b3 = linear_init(ks[4], ks[5], 256, 1)
    return (w1, b1, w2, b2, w3, b3)


def critic_reference(x, params, compute_dtype=jnp.float32):
    """Pure-JAX reference mirroring the kernel's numerics (same casts)."""
    w1, b1, w2, b2, w3, b3 = params
    cd = compute_dtype
    h1 = jnp.dot(x.astype(cd), w1.T.astype(cd),
                 preferred_element_type=jnp.float32) + b1
    h1 = jnp.maximum(h1, 0.0)
    h2 = jnp.dot(h1.astype(cd), w2.T.astype(cd),
                 preferred_element_type=jnp.float32) + b2
    h2 = jnp.maximum(h2, 0.0)
    return jnp.dot(h2, w3.T) + b3                     # (B, 1), f32 head


if __name__ == "__main__":
    key = jax.random.PRNGKey(0)
    k_params, k_x1, k_x2, k_x3 = jax.random.split(key, 4)

    state_dim = 32
    params = init_critic_params(k_params, state_dim)

    # --- small single-tile batch, exact f32 semantics check -----------------
    kp_f32 = prepare_critic_params(params, use_bf16=False)
    x_small = jax.random.normal(k_x1, (8, state_dim), dtype=jnp.float32)
    v_f32 = jax.block_until_ready(critic_forward(x_small, kp_f32))
    ref_f32 = critic_reference(x_small, params, jnp.float32)
    assert v_f32.shape == (8, 1)
    assert jnp.allclose(v_f32, ref_f32, atol=1e-4, rtol=1e-4)

    # --- same batch, bf16 MXU fast path --------------------------------------
    kp_bf16 = prepare_critic_params(params, use_bf16=True)
    v_bf16 = jax.block_until_ready(critic_forward(x_small, kp_bf16))
    ref_bf16 = critic_reference(x_small, params, jnp.bfloat16)
    assert jnp.allclose(v_bf16, ref_bf16, atol=2e-3, rtol=2e-3)
    assert jnp.allclose(v_bf16, ref_f32, atol=5e-2, rtol=5e-2)

    # --- 128 <= B < 256: two 128-lane tiles, uneven last block (no wrapper pad)
    x_mid = jax.random.normal(k_x2, (140, state_dim), dtype=jnp.float32)
    v_mid = jax.block_until_ready(critic_forward(x_mid, kp_bf16))
    assert v_mid.shape == (140, 1)
    assert jnp.allclose(v_mid, critic_reference(x_mid, params, jnp.bfloat16),
                        atol=2e-3, rtol=2e-3)

    # --- larger multi-tile grid with uneven last block ------------------------
    x_big = jax.random.normal(k_x3, (300, state_dim), dtype=jnp.float32)
    v_big = jax.block_until_ready(critic_forward(x_big, kp_bf16))
    assert v_big.shape == (300, 1)
    assert jnp.allclose(v_big, critic_reference(x_big, params, jnp.bfloat16),
                        atol=2e-3, rtol=2e-3)

    print("KERNEL_OK")
</pallas_src>

<mosaic_0001>
module attributes {stable_mosaic.version = 11 : i64} {
  func.func @critic_kernel(%arg0: i32, %arg1: memref<8x32xf32, #tpu.memory_space<vmem>>, %arg2: memref<512x32xf32, #tpu.memory_space<vmem>>, %arg3: memref<512x1xf32, #tpu.memory_space<vmem>>, %arg4: memref<256x512xf32, #tpu.memory_space<vmem>>, %arg5: memref<256x1xf32, #tpu.memory_space<vmem>>, %arg6: memref<256x1xf32, #tpu.memory_space<vmem>>, %arg7: memref<1x1xf32, #tpu.memory_space<vmem>>, %arg8: memref<1x8xf32, #tpu.memory_space<vmem>>) attributes {dimension_semantics = [#tpu.dimension_semantics<parallel>], iteration_bounds = array<i64: 1>, scalar_prefetch = 0 : i64, scratch_operands = 0 : i64, tpu.core_type = #tpu.core_type<tc>, window_params = [{transform_indices = @transform_0, window_bounds = array<i64: 8, 32>}, {pipeline_mode = #tpu.pipeline_mode<synchronous>, transform_indices = @transform_1, window_bounds = array<i64: 512, 32>}, {pipeline_mode = #tpu.pipeline_mode<synchronous>, transform_indices = @transform_2, window_bounds = array<i64: 512, 1>}, {pipeline_mode = #tpu.pipeline_mode<synchronous>, transform_indices = @transform_3, window_bounds = array<i64: 256, 512>}, {pipeline_mode = #tpu.pipeline_mode<synchronous>, transform_indices = @transform_4, window_bounds = array<i64: 256, 1>}, {pipeline_mode = #tpu.pipeline_mode<synchronous>, transform_indices = @transform_5, window_bounds = array<i64: 256, 1>}, {pipeline_mode = #tpu.pipeline_mode<synchronous>, transform_indices = @transform_6, window_bounds = array<i64: 1, 1>}, {transform_indices = @transform_7, window_bounds = array<i64: 1, 8>}]} {
    %c0 = arith.constant 0 : index
    %c0_0 = arith.constant 0 : index
    %0 = vector.load %arg1[%c0, %c0_0] : memref<8x32xf32, #tpu.memory_space<vmem>>, vector<8x32xf32>
    %c0_1 = arith.constant 0 : index
    %c0_2 = arith.constant 0 : index
    %1 = vector.load %arg2[%c0_1, %c0_2] : memref<512x32xf32, #tpu.memory_space<vmem>>, vector<512x32xf32>
    %cst = arith.constant dense<0.000000e+00> : vector<512x8xf32>
    %2 = tpu.matmul %1, %0, %cst {dimension_numbers = #tpu.dot_dimension_numbers<[1], [1], [0], [0], [0, 0, 1, 0], [], []>} : vector<512x32xf32>, vector<8x32xf32>, vector<512x8xf32> -> vector<512x8xf32>
    %c0_3 = arith.constant 0 : index
    %c0_4 = arith.constant 0 : index
    %3 = vector.load %arg3[%c0_3, %c0_4] : memref<512x1xf32, #tpu.memory_space<vmem>>, vector<512x1xf32>
    %4 = vector.broadcast %3 : vector<512x1xf32> to vector<512x8xf32>
    %5 = arith.addf %2, %4 : vector<512x8xf32>
    %cst_5 = arith.constant 0.000000e+00 : f32
    %6 = vector.broadcast %cst_5 : f32 to vector<512x8xf32>
    %7 = arith.maximumf %5, %6 : vector<512x8xf32>
    %c0_6 = arith.constant 0 : index
    %c0_7 = arith.constant 0 : index
    %8 = vector.load %arg4[%c0_6, %c0_7] : memref<256x512xf32, #tpu.memory_space<vmem>>, vector<256x512xf32>
    %cst_8 = arith.constant dense<0.000000e+00> : vector<256x8xf32>
    %9 = tpu.matmul %8, %7, %cst_8 {dimension_numbers = #tpu.dot_dimension_numbers<[1], [0], [0], [1], [0, 0, 1, 1], [], []>} : vector<256x512xf32>, vector<512x8xf32>, vector<256x8xf32> -> vector<256x8xf32>
    %c0_9 = arith.constant 0 : index
    %c0_10 = arith.constant 0 : index
    %10 = vector.load %arg5[%c0_9, %c0_10] : memref<256x1xf32, #tpu.memory_space<vmem>>, vector<256x1xf32>
    %11 = vector.broadcast %10 : vector<256x1xf32> to vector<256x8xf32>
    %12 = arith.addf %9, %11 : vector<256x8xf32>
    %cst_11 = arith.constant 0.000000e+00 : f32
    %13 = vector.broadcast %cst_11 : f32 to vector<256x8xf32>
    %14 = arith.maximumf %12, %13 : vector<256x8xf32>
    %c0_12 = arith.constant 0 : index
    %c0_13 = arith.constant 0 : index
    %15 = vector.load %arg6[%c0_12, %c0_13] : memref<256x1xf32, #tpu.memory_space<vmem>>, vector<256x1xf32>
    %16 = vector.broadcast %15 : vector<256x1xf32> to vector<256x8xf32>
    %17 = arith.mulf %14, %16 : vector<256x8xf32>
    %cst_14 = arith.constant dense<0.000000e+00> : vector<8xf32>
    %18 = vector.multi_reduction <add>, %17, %cst_14 [0] : vector<256x8xf32> to vector<8xf32>
    %19 = vector.shape_cast %18 : vector<8xf32> to vector<1x8xf32>
    %c0_15 = arith.constant 0 : index
    %c0_16 = arith.constant 0 : index
    %20 = vector.load %arg7[%c0_15, %c0_16] : memref<1x1xf32, #tpu.memory_space<vmem>>, vector<1x1xf32>
    %21 = vector.broadcast %20 : vector<1x1xf32> to vector<1x8xf32>
    %22 = arith.addf %19, %21 : vector<1x8xf32>
    %c0_17 = arith.constant 0 : index
    %c0_18 = arith.constant 0 : index
    %23 = vector.load %arg8[%c0_17, %c0_18] : memref<1x8xf32, #tpu.memory_space<vmem>>, vector<1x8xf32>
    tpu.vector_store %arg8[%c0_17, %c0_18], %22 {strides = array<i32>} : memref<1x8xf32, #tpu.memory_space<vmem>>, vector<1x8xf32>,
    return
  }
  func.func @transform_0(%arg0: i32) -> (i32, i32) {
    %c0_i32 = arith.constant 0 : i32
    %c0_i32_0 = arith.constant 0 : i32
    return %arg0, %c0_i32 : i32, i32
  }
  func.func @transform_1(%arg0: i32) -> (i32, i32) {
    %c0_i32 = arith.constant 0 : i32
    %c0_i32_0 = arith.constant 0 : i32
    %c0_i32_1 = arith.constant 0 : i32
    return %c0_i32, %c0_i32_0 : i32, i32
  }
  func.func @transform_2(%arg0: i32) -> (i32, i32) {
    %c0_i32 = arith.constant 0 : i32
    %c0_i32_0 = arith.constant 0 : i32
    %c0_i32_1 = arith.constant 0 : i32
    return %c0_i32, %c0_i32_0 : i32, i32
  }
  func.func @transform_3(%arg0: i32) -> (i32, i32) {
    %c0_i32 = arith.constant 0 : i32
    %c0_i32_0 = arith.constant 0 : i32
    %c0_i32_1 = arith.constant 0 : i32
    return %c0_i32, %c0_i32_0 : i32, i32
  }
  func.func @transform_4(%arg0: i32) -> (i32, i32) {
    %c0_i32 = arith.constant 0 : i32
    %c0_i32_0 = arith.constant 0 : i32
    %c0_i32_1 = arith.constant 0 : i32
    return %c0_i32, %c0_i32_0 : i32, i32
  }
  func.func @transform_5(%arg0: i32) -> (i32, i32) {
    %c0_i32 = arith.constant 0 : i32
    %c0_i32_0 = arith.constant 0 : i32
    %c0_i32_1 = arith.constant 0 : i32
    return %c0_i32, %c0_i32_0 : i32, i32
  }
  func.func @transform_6(%arg0: i32) -> (i32, i32) {
    %c0_i32 = arith.constant 0 : i32
    %c0_i32_0 = arith.constant 0 : i32
    %c0_i32_1 = arith.constant 0 : i32
    return %c0_i32, %c0_i32_0 : i32, i32
  }
  func.func @transform_7(%arg0: i32) -> (i32, i32) {
    %c0_i32 = arith.constant 0 : i32
    %c0_i32_0 = arith.constant 0 : i32
    return %c0_i32, %arg0 : i32, i32
  }
}

</mosaic_0001>

<bundles_post_ra>
// kernel: tpu_custom_call.1
= control target key start
LH: loop header
LB: loop body
LE: loop exit
PB: predicated region body
PF: predicated region fallthrough
CT: control target
= control target key end

     0   :  { %s4270_s0 = inlined_call_operand.vmem [shape: f32[8,32], index: 0, kind: input, shape index: {}]   ;;  %s4271_s1 = inlined_call_operand.vmem [shape: f32[512,32], index: 1, kind: input, shape index: {}]   ;;  %s4272_s2 = inlined_call_operand.vmem [shape: f32[512,1], index: 2, kind: input, shape index: {}]   ;;  %s4273_s3 = inlined_call_operand.vmem [shape: f32[256,512], index: 3, kind: input, shape index: {}]   ;;  %s4274_s4 = inlined_call_operand.vmem [shape: f32[256,1], index: 4, kind: input, shape index: {}]   ;;  %s4275_s5 = inlined_call_operand.vmem [shape: f32[256,1], index: 5, kind: input, shape index: {}]   ;;  %s4276_s6 = inlined_call_operand.<no memory space> [shape: f32[1,1], index: 6, kind: input, shape index: {}]   ;;  %s4277_s7 = inlined_call_operand.hbm [shape: f32[1,8], index: 7, kind: output, shape index: {}]  }
   0x1   :  { %v12_v0 = vstv %s4276_s6 }
   0x2   :  { %13 = vst [vmem:[#allocation2] sm:$0x1] %v12_v0 }
   0x3   :  { %v29_v1 = vld [vmem:[%s4270_s0] sm:$0xff]  ;;  %vm478_vm0 = vcmask 261120   ;;  %v96_v2 = vld [vmem:[%s4272_s2 + $0x10] sm:$0xff]  ;;  %v2503_v4 = vmov 0   ;;  %v31_v7 = vld [vmem:[%s4271_s1 + $0x8] sm:$0xff] }
   0x4   :  { %v94_v3 = vld [vmem:[%s4272_s2] sm:$0xff]  ;;  %2480 = vset.pattern.permute.xlu1 %v2503_v4  ;;  %2479 = vset.pattern.permute.xlu0 %v2503_v4  ;;  %v63_v8 = vld [vmem:[%s4271_s1 + $0x108] sm:$0xff]  ;;  %v97_v9 = vld [vmem:[%s4272_s2 + $0x18] sm:$0xff] }
   0x5   :  { %2376 = vmatprep.subr.msk.mxu0 %vm478_vm0, %v29_v1  ;;  %2474 = vmatprep.subr.msk.mxu1 %vm478_vm0, %v29_v1  ;;  %v30_v5 = vld [vmem:[%s4271_s1] sm:$0xff]  ;;  %v95_v10 = vld [vmem:[%s4272_s2 + $0x8] sm:$0xff]  ;;  %v32_v11 = vld [vmem:[%s4271_s1 + $0x10] sm:$0xff] }
   0x6   :  { %v62_v6 = vld [vmem:[%s4271_s1 + $0x100] sm:$0xff]  ;;  %170 = vperm.xlu1 %2480, %v96_v2   ;;  %160 = vperm.xlu0 %2479, %v94_v3   ;;  %v64_v12 = vld [vmem:[%s4271_s1 + $0x110] sm:$0xff]  ;;  %v33_v13 = vld [vmem:[%s4271_s1 + $0x18] sm:$0xff] }
   0x7   :  { %2377 = vmatpush3.xpose.msk.msra.mxu0 %vm478_vm0, %v29_v1  ;;  %2475 = vmatpush3.xpose.msk.msra.mxu1 %vm478_vm0, %v29_v1  ;;  %v65_v14 = vld [vmem:[%s4271_s1 + $0x118] sm:$0xff]  ;;  %v99_v15 = vld [vmem:[%s4272_s2 + $0x28] sm:$0xff]  ;;  %v98_v16 = vld [vmem:[%s4272_s2 + $0x20] sm:$0xff] }
   0x8   :  { %2378 = vmatprep.mubr.msk.f32.mxu0 %vm478_vm0, %v30_v5  ;;  %2426 = vmatprep.mubr.msk.f32.mxu1 %vm478_vm0, %v62_v6  ;;  %v34_v17 = vld [vmem:[%s4271_s1 + $0x20] sm:$0xff]  ;;  %v35_v19 = vld [vmem:[%s4271_s1 + $0x28] sm:$0xff]  ;;  %v101_v21 = vld [vmem:[%s4272_s2 + $0x38] sm:$0xff] }
   0x9   :  { %v66_v18 = vld [vmem:[%s4271_s1 + $0x120] sm:$0xff]  ;;  %v67_v20 = vld [vmem:[%s4271_s1 + $0x128] sm:$0xff]  ;;  %v100_v22 = vld [vmem:[%s4272_s2 + $0x30] sm:$0xff] }
   0xa   :  { %2379 = vmatmul.mubr.msk.f32.vlgmr.msra.gmra.mxu0 %vm478_vm0, %v31_v7  ;;  %2427 = vmatmul.mubr.msk.f32.vlgmr.msra.gmra.mxu1 %vm478_vm0, %v63_v8  ;;  %v36_v23 = vld [vmem:[%s4271_s1 + $0x30] sm:$0xff]  ;;  %v37_v25 = vld [vmem:[%s4271_s1 + $0x38] sm:$0xff]  ;;  %v103_v27 = vld [vmem:[%s4272_s2 + $0x48] sm:$0xff] }
   0xb   :  { %175 = vperm.xlu1 %2480, %v97_v9   ;;  %165 = vperm.xlu0 %2479, %v95_v10   ;;  %v68_v24 = vld [vmem:[%s4271_s1 + $0x130] sm:$0xff]  ;;  %v69_v26 = vld [vmem:[%s4271_s1 + $0x138] sm:$0xff]  ;;  %v102_v28 = vld [vmem:[%s4272_s2 + $0x40] sm:$0xff] }
   0xc   :  { %2381 = vmatprep.mubr.msk.f32.mxu0 %vm478_vm0, %v32_v11  ;;  %2429 = vmatprep.mubr.msk.f32.mxu1 %vm478_vm0, %v64_v12  ;;  %v38_v29 = vld [vmem:[%s4271_s1 + $0x40] sm:$0xff]  ;;  %v39_v31 = vld [vmem:[%s4271_s1 + $0x48] sm:$0xff]  ;;  %v109_v33 = vld [vmem:[%s4272_s2 + $0x78] sm:$0xff] }
   0xd   :  { %v70_v30 = vld [vmem:[%s4271_s1 + $0x140] sm:$0xff]  ;;  %v71_v32 = vld [vmem:[%s4271_s1 + $0x148] sm:$0xff]  ;;  %v104_v34 = vld [vmem:[%s4272_s2 + $0x50] sm:$0xff] }
   0xe   :  { %2382 = vmatmul.mubr.msk.f32.gmra.mxu0 %vm478_vm0, %v33_v13  ;;  %2430 = vmatmul.mubr.msk.f32.gmra.mxu1 %vm478_vm0, %v65_v14  ;;  %v40_v35 = vld [vmem:[%s4271_s1 + $0x50] sm:$0xff]  ;;  %v41_v37 = vld [vmem:[%s4271_s1 + $0x58] sm:$0xff]  ;;  %v42_v41 = vld [vmem:[%s4271_s1 + $0x60] sm:$0xff] }
   0xf   :  { %185 = vperm.xlu1 %2480, %v99_v15   ;;  %180 = vperm.xlu0 %2479, %v98_v16   ;;  %v72_v36 = vld [vmem:[%s4271_s1 + $0x150] sm:$0xff]  ;;  %v73_v38 = vld [vmem:[%s4271_s1 + $0x158] sm:$0xff]  ;;  %v74_v42 = vld [vmem:[%s4271_s1 + $0x160] sm:$0xff] }
  0x10   :  { %2384 = vmatprep.mubr.msk.f32.mxu0 %vm478_vm0, %v34_v17  ;;  %2432 = vmatprep.mubr.msk.f32.mxu1 %vm478_vm0, %v66_v18  ;;  %v141_v39 = vld [vmem:[%s4272_s2 + $0x178] sm:$0xff]  ;;  %v108_v40 = vld [vmem:[%s4272_s2 + $0x70] sm:$0xff]  ;;  %v43_v43 = vld [vmem:[%s4271_s1 + $0x68] sm:$0xff] }
  0x11   :  { %v75_v44 = vld [vmem:[%s4271_s1 + $0x168] sm:$0xff]  ;;  %v140_v45 = vld [vmem:[%s4272_s2 + $0x170] sm:$0xff]  ;;  %v45_v49 = vld [vmem:[%s4271_s1 + $0x78] sm:$0xff] }
  0x12   :  { %2385 = vmatmul.mubr.msk.f32.gmra.mxu0 %vm478_vm0, %v35_v19  ;;  %2433 = vmatmul.mubr.msk.f32.gmra.mxu1 %vm478_vm0, %v67_v20  ;;  %v107_v46 = vld [vmem:[%s4272_s2 + $0x68] sm:$0xff]  ;;  %v44_v47 = vld [vmem:[%s4271_s1 + $0x70] sm:$0xff]  ;;  %v77_v50 = vld [vmem:[%s4271_s1 + $0x178] sm:$0xff] }
  0x13   :  { %195 = vperm.xlu1 %2480, %v101_v21   ;;  %190 = vperm.xlu0 %2479, %v100_v22   ;;  %v76_v48 = vld [vmem:[%s4271_s1 + $0x170] sm:$0xff]  ;;  %v139_v51 = vld [vmem:[%s4272_s2 + $0x168] sm:$0xff]  ;;  %v106_v52 = vld [vmem:[%s4272_s2 + $0x60] sm:$0xff] }
  0x14   :  { %2387 = vmatprep.mubr.msk.f32.mxu0 %vm478_vm0, %v36_v23  ;;  %2435 = vmatprep.mubr.msk.f32.mxu1 %vm478_vm0, %v68_v24  ;;  %v46_v53 = vld [vmem:[%s4271_s1 + $0x80] sm:$0xff]  ;;  %v47_v55 = vld [vmem:[%s4271_s1 + $0x88] sm:$0xff]  ;;  %v105_v58 = vld [vmem:[%s4272_s2 + $0x58] sm:$0xff] }
  0x15   :  { %v78_v54 = vld [vmem:[%s4271_s1 + $0x180] sm:$0xff]  ;;  %v79_v56 = vld [vmem:[%s4271_s1 + $0x188] sm:$0xff]  ;;  %v48_v59 = vld [vmem:[%s4271_s1 + $0x90] sm:$0xff] }
  0x16   :  { %2388 = vmatmul.mubr.msk.f32.gmra.mxu0 %vm478_vm0, %v37_v25  ;;  %2436 = vmatmul.mubr.msk.f32.gmra.mxu1 %vm478_vm0, %v69_v26  ;;  %v138_v57 = vld [vmem:[%s4272_s2 + $0x160] sm:$0xff]  ;;  %v80_v60 = vld [vmem:[%s4271_s1 + $0x190] sm:$0xff]  ;;  %v49_v61 = vld [vmem:[%s4271_s1 + $0x98] sm:$0xff] }
  0x17   :  { %205 = vperm.xlu1 %2480, %v103_v27   ;;  %200 = vperm.xlu0 %2479, %v102_v28   ;;  %v81_v62 = vld [vmem:[%s4271_s1 + $0x198] sm:$0xff]  ;;  %v136_v63 = vld [vmem:[%s4272_s2 + $0x150] sm:$0xff]  ;;  %v50_v1 = vld [vmem:[%s4271_s1 + $0xa0] sm:$0xff] }
  0x18   :  { %2390 = vmatprep.mubr.msk.f32.mxu0 %vm478_vm0, %v38_v29  ;;  %2438 = vmatprep.mubr.msk.f32.mxu1 %vm478_vm0, %v70_v30  ;;  %v137_v0 = vld [vmem:[%s4272_s2 + $0x158] sm:$0xff]  ;;  %v82_v2 = vld [vmem:[%s4271_s1 + $0x1a0] sm:$0xff]  ;;  %v51_v3 = vld [vmem:[%s4271_s1 + $0xa8] sm:$0xff] }
  0x19   :  { %v83_v4 = vld [vmem:[%s4271_s1 + $0x1a8] sm:$0xff]  ;;  %v134_v5 = vld [vmem:[%s4272_s2 + $0x140] sm:$0xff]  ;;  %v52_v7 = vld [vmem:[%s4271_s1 + $0xb0] sm:$0xff] }
  0x1a   :  { %2391 = vmatmul.mubr.msk.f32.gmra.mxu0 %vm478_vm0, %v39_v31  ;;  %2439 = vmatmul.mubr.msk.f32.gmra.mxu1 %vm478_vm0, %v71_v32  ;;  %v135_v6 = vld [vmem:[%s4272_s2 + $0x148] sm:$0xff]  ;;  %v84_v8 = vld [vmem:[%s4271_s1 + $0x1b0] sm:$0xff]  ;;  %v53_v9 = vld [vmem:[%s4271_s1 + $0xb8] sm:$0xff] }
  0x1b   :  { %235 = vperm.xlu1 %2480, %v109_v33   ;;  %210 = vperm.xlu0 %2479, %v104_v34   ;;  %v85_v10 = vld [vmem:[%s4271_s1 + $0x1b8] sm:$0xff]  ;;  %v132_v11 = vld [vmem:[%s4272_s2 + $0x130] sm:$0xff]  ;;  %v54_v13 = vld [vmem:[%s4271_s1 + $0xc0] sm:$0xff] }
  0x1c   :  { %2393 = vmatprep.mubr.msk.f32.mxu0 %vm478_vm0, %v40_v35  ;;  %2441 = vmatprep.mubr.msk.f32.mxu1 %vm478_vm0, %v72_v36  ;;  %v133_v12 = vld [vmem:[%s4272_s2 + $0x138] sm:$0xff]  ;;  %v86_v14 = vld [vmem:[%s4271_s1 + $0x1c0] sm:$0xff] }
  0x1e   :  { %2394 = vmatmul.mubr.msk.f32.gmra.mxu0 %vm478_vm0, %v41_v37  ;;  %2442 = vmatmul.mubr.msk.f32.gmra.mxu1 %vm478_vm0, %v73_v38 }
  0x1f   :  { %395 = vperm.xlu1 %2480, %v141_v39   ;;  %230 = vperm.xlu0 %2479, %v108_v40  }
  0x20   :  { %2396 = vmatprep.mubr.msk.f32.mxu0 %vm478_vm0, %v42_v41  ;;  %2444 = vmatprep.mubr.msk.f32.mxu1 %vm478_vm0, %v74_v42 }
  0x22   :  { %2397 = vmatmul.mubr.msk.f32.gmra.mxu0 %vm478_vm0, %v43_v43  ;;  %2445 = vmatmul.mubr.msk.f32.gmra.mxu1 %vm478_vm0, %v75_v44 }
  0x23   :  { %390 = vperm.xlu1 %2480, %v140_v45   ;;  %225 = vperm.xlu0 %2479, %v107_v46  }
  0x24   :  { %2399 = vmatprep.mubr.msk.f32.mxu0 %vm478_vm0, %v44_v47  ;;  %2447 = vmatprep.mubr.msk.f32.mxu1 %vm478_vm0, %v76_v48 }
  0x26   :  { %2400 = vmatmul.mubr.msk.f32.gmra.mxu0 %vm478_vm0, %v45_v49  ;;  %2448 = vmatmul.mubr.msk.f32.gmra.mxu1 %vm478_vm0, %v77_v50 }
  0x27   :  { %385 = vperm.xlu1 %2480, %v139_v51   ;;  %220 = vperm.xlu0 %2479, %v106_v52  }
  0x28   :  { %2402 = vmatprep.mubr.msk.f32.mxu0 %vm478_vm0, %v46_v53  ;;  %2450 = vmatprep.mubr.msk.f32.mxu1 %vm478_vm0, %v78_v54 }
  0x2a   :  { %2403 = vmatmul.mubr.msk.f32.gmra.mxu0 %vm478_vm0, %v47_v55  ;;  %2451 = vmatmul.mubr.msk.f32.gmra.mxu1 %vm478_vm0, %v79_v56 }
  0x2b   :  { %380 = vperm.xlu1 %2480, %v138_v57   ;;  %215 = vperm.xlu0 %2479, %v105_v58  }
  0x2c   :  { %2405 = vmatprep.mubr.msk.f32.mxu0 %vm478_vm0, %v48_v59  ;;  %2453 = vmatprep.mubr.msk.f32.mxu1 %vm478_vm0, %v80_v60 }
  0x2e   :  { %2406 = vmatmul.mubr.msk.f32.gmra.mxu0 %vm478_vm0, %v49_v61  ;;  %2454 = vmatmul.mubr.msk.f32.gmra.mxu1 %vm478_vm0, %v81_v62 }
  0x2f   :  { %370 = vperm.xlu1 %2480, %v136_v63   ;;  %375 = vperm.xlu0 %2479, %v137_v0  }
  0x30   :  { %2408 = vmatprep.mubr.msk.f32.mxu0 %vm478_vm0, %v50_v1  ;;  %2456 = vmatprep.mubr.msk.f32.mxu1 %vm478_vm0, %v82_v2 }
  0x32   :  { %2409 = vmatmul.mubr.msk.f32.gmra.mxu0 %vm478_vm0, %v51_v3  ;;  %2457 = vmatmul.mubr.msk.f32.gmra.mxu1 %vm478_vm0, %v83_v4 }
  0x33   :  { %360 = vperm.xlu1 %2480, %v134_v5   ;;  %365 = vperm.xlu0 %2479, %v135_v6  }
  0x34   :  { %2411 = vmatprep.mubr.msk.f32.mxu0 %vm478_vm0, %v52_v7  ;;  %2459 = vmatprep.mubr.msk.f32.mxu1 %vm478_vm0, %v84_v8 }
  0x36   :  { %2412 = vmatmul.mubr.msk.f32.gmra.mxu0 %vm478_vm0, %v53_v9  ;;  %2460 = vmatmul.mubr.msk.f32.gmra.mxu1 %vm478_vm0, %v85_v10 }
  0x37   :  { %14 = vsyncpa [#allocation4], 0  ;;  %350 = vperm.xlu1 %2480, %v132_v11   ;;  %355 = vperm.xlu0 %2479, %v133_v12   ;;  %v55_v15 = vld [vmem:[%s4271_s1 + $0xc8] sm:$0xff]  ;;  %v130_v17 = vld [vmem:[%s4272_s2 + $0x120] sm:$0xff]  ;;  %v4278_v57 = vmov 0.0   ;;  %vm2149_vm1 = vcmask 64512  }
  0x38   :  { %v87_v16 = vld [vmem:[%s4271_s1 + $0x1c8] sm:$0xff]  ;;  %2414 = vmatprep.mubr.msk.f32.mxu0 %vm478_vm0, %v54_v13  ;;  %2462 = vmatprep.mubr.msk.f32.mxu1 %vm478_vm0, %v86_v14  ;;  %v56_v19 = vld [vmem:[%s4271_s1 + $0xd0] sm:$0xff]  ;;  %v57_v21 = vld [vmem:[%s4271_s1 + $0xd8] sm:$0xff]  ;;  %vm2230_vm2 = vcmask 57344  }
  0x39   :  { %v131_v18 = vld [vmem:[%s4272_s2 + $0x128] sm:$0xff]  ;;  %v88_v20 = vld [vmem:[%s4271_s1 + $0x1d0] sm:$0xff]  ;;  %v89_v22 = vld [vmem:[%s4271_s1 + $0x1d8] sm:$0xff]  ;;  %1443 = vmatprep.subr.mxu1 %v4278_v57  ;;  %1668 = vmatprep.subr.mxu0 %v4278_v57 }
  0x3a   :  { %2415 = vmatmul.mubr.msk.f32.gmra.mxu0 %vm478_vm0, %v55_v15  ;;  %2463 = vmatmul.mubr.msk.f32.gmra.mxu1 %vm478_vm0, %v87_v16  ;;  %v128_v23 = vld [vmem:[%s4272_s2 + $0x110] sm:$0xff]  ;;  %v129_v24 = vld [vmem:[%s4272_s2 + $0x118] sm:$0xff]  ;;  %v58_v25 = vld [vmem:[%s4271_s1 + $0xe0] sm:$0xff] }
  0x3b   :  { %340 = vperm.xlu1 %2480, %v130_v17   ;;  %345 = vperm.xlu0 %2479, %v131_v18   ;;  %v90_v26 = vld [vmem:[%s4271_s1 + $0x1e0] sm:$0xff]  ;;  %v59_v27 = vld [vmem:[%s4271_s1 + $0xe8] sm:$0xff]  ;;  %v125_v29 = vld [vmem:[%s4272_s2 + $0xf8] sm:$0xff] }
  0x3c   :  { %2417 = vmatprep.mubr.msk.f32.mxu0 %vm478_vm0, %v56_v19  ;;  %2465 = vmatprep.mubr.msk.f32.mxu1 %vm478_vm0, %v88_v20  ;;  %v91_v28 = vld [vmem:[%s4271_s1 + $0x1e8] sm:$0xff]  ;;  %v60_v31 = vld [vmem:[%s4271_s1 + $0xf0] sm:$0xff]  ;;  %v61_v33 = vld [vmem:[%s4271_s1 + $0xf8] sm:$0xff] }
  0x3d   :  { %v127_v30 = vld [vmem:[%s4272_s2 + $0x108] sm:$0xff]  ;;  %v92_v32 = vld [vmem:[%s4271_s1 + $0x1f0] sm:$0xff]  ;;  %v93_v34 = vld [vmem:[%s4271_s1 + $0x1f8] sm:$0xff] }
  0x3e   :  { %2418 = vmatmul.mubr.msk.f32.gmra.mxu0 %vm478_vm0, %v57_v21  ;;  %2466 = vmatmul.mubr.msk.f32.gmra.mxu1 %vm478_vm0, %v89_v22  ;;  %v124_v35 = vld [vmem:[%s4272_s2 + $0xf0] sm:$0xff]  ;;  %v126_v36 = vld [vmem:[%s4272_s2 + $0x100] sm:$0xff]  ;;  %v123_v37 = vld [vmem:[%s4272_s2 + $0xe8] sm:$0xff] }
  0x3f   :  { %330 = vperm.xlu1 %2480, %v128_v23   ;;  %335 = vperm.xlu0 %2479, %v129_v24   ;;  %v157_v38 = vld [vmem:[%s4272_s2 + $0x1f8] sm:$0xff]  ;;  %v122_v39 = vld [vmem:[%s4272_s2 + $0xe0] sm:$0xff]  ;;  %v156_v40 = vld [vmem:[%s4272_s2 + $0x1f0] sm:$0xff] }
  0x40   :  { %2420 = vmatprep.mubr.msk.f32.mxu0 %vm478_vm0, %v58_v25  ;;  %2468 = vmatprep.mubr.msk.f32.mxu1 %vm478_vm0, %v90_v26  ;;  %v121_v41 = vld [vmem:[%s4272_s2 + $0xd8] sm:$0xff]  ;;  %v155_v42 = vld [vmem:[%s4272_s2 + $0x1e8] sm:$0xff]  ;;  %v120_v43 = vld [vmem:[%s4272_s2 + $0xd0] sm:$0xff] }
  0x41   :  { %v154_v44 = vld [vmem:[%s4272_s2 + $0x1e0] sm:$0xff]  ;;  %v119_v45 = vld [vmem:[%s4272_s2 + $0xc8] sm:$0xff]  ;;  %v153_v46 = vld [vmem:[%s4272_s2 + $0x1d8] sm:$0xff] }
  0x42   :  { %2421 = vmatmul.mubr.msk.f32.gmra.mxu0 %vm478_vm0, %v59_v27  ;;  %2469 = vmatmul.mubr.msk.f32.gmra.mxu1 %vm478_vm0, %v91_v28  ;;  %v118_v47 = vld [vmem:[%s4272_s2 + $0xc0] sm:$0xff]  ;;  %v152_v48 = vld [vmem:[%s4272_s2 + $0x1d0] sm:$0xff]  ;;  %v117_v49 = vld [vmem:[%s4272_s2 + $0xb8] sm:$0xff] }
  0x43   :  { %315 = vperm.xlu1 %2480, %v125_v29   ;;  %325 = vperm.xlu0 %2479, %v127_v30   ;;  %v151_v50 = vld [vmem:[%s4272_s2 + $0x1c8] sm:$0xff]  ;;  %v116_v51 = vld [vmem:[%s4272_s2 + $0xb0] sm:$0xff]  ;;  %v150_v52 = vld [vmem:[%s4272_s2 + $0x1c0] sm:$0xff] }
  0x44   :  { %2423 = vmatprep.mubr.msk.f32.mxu0 %vm478_vm0, %v60_v31  ;;  %2471 = vmatprep.mubr.msk.f32.mxu1 %vm478_vm0, %v92_v32  ;;  %v115_v53 = vld [vmem:[%s4272_s2 + $0xa8] sm:$0xff]  ;;  %v149_v54 = vld [vmem:[%s4272_s2 + $0x1b8] sm:$0xff]  ;;  %v114_v55 = vld [vmem:[%s4272_s2 + $0xa0] sm:$0xff] }
  0x45   :  { %v148_v56 = vld [vmem:[%s4272_s2 + $0x1b0] sm:$0xff]  ;;  %v113_v58 = vld [vmem:[%s4272_s2 + $0x98] sm:$0xff]  ;;  %v147_v59 = vld [vmem:[%s4272_s2 + $0x1a8] sm:$0xff] }
  0x46   :  { %2424 = vmatmul.mubr.msk.f32.gmra.mxu0 %vm478_vm0, %v61_v33  ;;  %2472 = vmatmul.mubr.msk.f32.gmra.mxu1 %vm478_vm0, %v93_v34  ;;  %v112_v60 = vld [vmem:[%s4272_s2 + $0x90] sm:$0xff]  ;;  %v146_v61 = vld [vmem:[%s4272_s2 + $0x1a0] sm:$0xff]  ;;  %v111_v62 = vld [vmem:[%s4272_s2 + $0x88] sm:$0xff] }
  0x47   :  { %310 = vperm.xlu1 %2480, %v124_v35   ;;  %320 = vperm.xlu0 %2479, %v126_v36   ;;  %v145_v63 = vld [vmem:[%s4272_s2 + $0x198] sm:$0xff]  ;;  %v110_v0 = vld [vmem:[%s4272_s2 + $0x80] sm:$0xff]  ;;  %v144_v1 = vld [vmem:[%s4272_s2 + $0x190] sm:$0xff] }
  0x48   :  { %v142_v2 = vld [vmem:[%s4272_s2 + $0x180] sm:$0xff]  ;;  %v143_v3 = vld [vmem:[%s4272_s2 + $0x188] sm:$0xff]  ;;  %v1254_v10 = vld [vmem:[%s4274_s4 + $0x18] sm:$0xff] }
  0x49   :  { %v1252_v6 = vld [vmem:[%s4274_s4 + $0x8] sm:$0xff]  ;;  %v1251_v7 = vld [vmem:[%s4274_s4] sm:$0xff]  ;;  %v1253_v11 = vld [vmem:[%s4274_s4 + $0x10] sm:$0xff] }
  0x4a   :  { %v1256_v14 = vld [vmem:[%s4274_s4 + $0x28] sm:$0xff]  ;;  %v1255_v15 = vld [vmem:[%s4274_s4 + $0x20] sm:$0xff]  ;;  %v1258_v18 = vld [vmem:[%s4274_s4 + $0x38] sm:$0xff] }
  0x4b   :  { %305 = vperm.xlu1 %2480, %v123_v37   ;;  %475 = vperm.xlu0 %2479, %v157_v38   ;;  %v1257_v19 = vld [vmem:[%s4274_s4 + $0x30] sm:$0xff]  ;;  %v1260_v22 = vld [vmem:[%s4274_s4 + $0x48] sm:$0xff]  ;;  %v1259_v23 = vld [vmem:[%s4274_s4 + $0x40] sm:$0xff] }
  0x4c   :  { %v1262_v26 = vld [vmem:[%s4274_s4 + $0x58] sm:$0xff]  ;;  %v1261_v27 = vld [vmem:[%s4274_s4 + $0x50] sm:$0xff]  ;;  %v1264_v30 = vld [vmem:[%s4274_s4 + $0x68] sm:$0xff] }
  0x4d   :  { %v1263_v31 = vld [vmem:[%s4274_s4 + $0x60] sm:$0xff]  ;;  %v1266_v34 = vld [vmem:[%s4274_s4 + $0x78] sm:$0xff]  ;;  %v1265_v35 = vld [vmem:[%s4274_s4 + $0x70] sm:$0xff] }
  0x4e   :  { %v1268_v38 = vld [vmem:[%s4274_s4 + $0x88] sm:$0xff] }
  0x4f   :  { %300 = vperm.xlu1 %2480, %v122_v39   ;;  %470 = vperm.xlu0 %2479, %v156_v40   ;;  %v1267_v39 = vld [vmem:[%s4274_s4 + $0x80] sm:$0xff] }
  0x53   :  { %295 = vperm.xlu1 %2480, %v121_v41   ;;  %465 = vperm.xlu0 %2479, %v155_v42   ;;  %v1270_v42 = vld [vmem:[%s4274_s4 + $0x98] sm:$0xff] }
  0x57   :  { %290 = vperm.xlu1 %2480, %v120_v43   ;;  %460 = vperm.xlu0 %2479, %v154_v44   ;;  %v1269_v43 = vld [vmem:[%s4274_s4 + $0x90] sm:$0xff] }
  0x5b   :  { %285 = vperm.xlu1 %2480, %v119_v45   ;;  %455 = vperm.xlu0 %2479, %v153_v46   ;;  %v1272_v46 = vld [vmem:[%s4274_s4 + $0xa8] sm:$0xff] }
  0x5f   :  { %280 = vperm.xlu1 %2480, %v118_v47   ;;  %450 = vperm.xlu0 %2479, %v152_v48   ;;  %v1271_v47 = vld [vmem:[%s4274_s4 + $0xa0] sm:$0xff] }
  0x63   :  { %275 = vperm.xlu1 %2480, %v117_v49   ;;  %445 = vperm.xlu0 %2479, %v151_v50   ;;  %v1274_v49 = vld [vmem:[%s4274_s4 + $0xb8] sm:$0xff] }
  0x67   :  { %270 = vperm.xlu1 %2480, %v116_v51   ;;  %440 = vperm.xlu0 %2479, %v150_v52   ;;  %v1273_v51 = vld [vmem:[%s4274_s4 + $0xb0] sm:$0xff]  ;;  %v1124_v52 = vld [vmem:[%s4273_s3 + $0x8] sm:$0xff] }
  0x68   :  { %1507 = vmatprep.mubr.f32.mxu1 %v1124_v52 }
  0x6b   :  { %265 = vperm.xlu1 %2480, %v115_v53   ;;  %435 = vperm.xlu0 %2479, %v149_v54   ;;  %v1126_v53 = vld [vmem:[%s4273_s3 + $0x18] sm:$0xff] }
  0x6c   :  { %1732 = vmatprep.mubr.f32.mxu0 %v1126_v53  ;;  %v1936_v53 = vld [vmem:[%s4275_s5 + $0x58] sm:$0xff] }
  0x6f   :  { %260 = vperm.xlu1 %2480, %v114_v55   ;;  %430 = vperm.xlu0 %2479, %v148_v56   ;;  %v1276_v55 = vld [vmem:[%s4274_s4 + $0xc8] sm:$0xff]  ;;  %v1275_v56 = vld [vmem:[%s4274_s4 + $0xc0] sm:$0xff] }
  0x73   :  { %255 = vperm.xlu1 %2480, %v113_v58   ;;  %425 = vperm.xlu0 %2479, %v147_v59   ;;  %v1278_v59 = vld [vmem:[%s4274_s4 + $0xd8] sm:$0xff] }
  0x77   :  { %250 = vperm.xlu1 %2480, %v112_v60   ;;  %420 = vperm.xlu0 %2479, %v146_v61   ;;  %v1277_v60 = vld [vmem:[%s4274_s4 + $0xd0] sm:$0xff] }
  0x7b   :  { %245 = vperm.xlu1 %2480, %v111_v62   ;;  %415 = vperm.xlu0 %2479, %v145_v63   ;;  %v1280_v63 = vld [vmem:[%s4274_s4 + $0xe8] sm:$0xff] }
  0x7f   :  { %240 = vperm.xlu1 %2480, %v110_v0   ;;  %410 = vperm.xlu0 %2479, %v144_v1   ;;  %v1279_v0 = vld [vmem:[%s4274_s4 + $0xe0] sm:$0xff] }
  0x81   :  { %v3006_v4 = vpop.permute.xlu1 %170  ;;  %v3008_v5 = vpop.permute.xlu0 %160 }
  0x82   :  { %4280 = vst [vmem:[#allocation6_spill] sm:$0xff] %v3008_v5 }
  0x83   :  { %400 = vperm.xlu1 %2480, %v142_v2   ;;  %405 = vperm.xlu0 %2479, %v143_v3   ;;  %v1926_v2 = vld [vmem:[%s4275_s5 + $0x8] sm:$0xff]  ;;  %v1925_v3 = vld [vmem:[%s4275_s5] sm:$0xff] }
  0x86   :  { %v3016_v8 = vpop.permute.xlu1 %175  ;;  %v3018_v9 = vpop.permute.xlu0 %165 }
  0x87   :  { %4281 = vst [vmem:[#allocation7_spill] sm:$0xff] %v3018_v9  ;;  %1290 = vperm.xlu1 %2480, %v1252_v6   ;;  %1285 = vperm.xlu0 %2479, %v1251_v7   ;;  %v1928_v7 = vld [vmem:[%s4275_s5 + $0x18] sm:$0xff] }
  0x8a   :  { %v3026_v12 = vpop.permute.xlu1 %185  ;;  %v3028_v13 = vpop.permute.xlu0 %180 }
  0x8b   :  { %1300 = vperm.xlu1 %2480, %v1254_v10   ;;  %1295 = vperm.xlu0 %2479, %v1253_v11   ;;  %v1927_v10 = vld [vmem:[%s4275_s5 + $0x10] sm:$0xff] }
  0x8e   :  { %v3036_v16 = vpop.permute.xlu1 %195  ;;  %v3038_v17 = vpop.permute.xlu0 %190 }
  0x8f   :  { %1310 = vperm.xlu1 %2480, %v1256_v14   ;;  %1305 = vperm.xlu0 %2479, %v1255_v15   ;;  %v1930_v15 = vld [vmem:[%s4275_s5 + $0x28] sm:$0xff] }
  0x92   :  { %v3046_v20 = vpop.permute.xlu1 %205  ;;  %v3048_v21 = vpop.permute.xlu0 %200 }
  0x93   :  { %1320 = vperm.xlu1 %2480, %v1258_v18   ;;  %1315 = vperm.xlu0 %2479, %v1257_v19   ;;  %v1929_v18 = vld [vmem:[%s4275_s5 + $0x20] sm:$0xff] }
  0x96   :  { %v3056_v24 = vpop.permute.xlu1 %235  ;;  %v3058_v25 = vpop.permute.xlu0 %210 }
  0x97   :  { %1330 = vperm.xlu1 %2480, %v1260_v22   ;;  %1325 = vperm.xlu0 %2479, %v1259_v23  }
  0x9a   :  { %v3066_v28 = vpop.permute.xlu1 %395  ;;  %v3068_v29 = vpop.permute.xlu0 %230 }
  0x9b   :  { %1340 = vperm.xlu1 %2480, %v1262_v26   ;;  %1335 = vperm.xlu0 %2479, %v1261_v27   ;;  %v1932_v26 = vld [vmem:[%s4275_s5 + $0x38] sm:$0xff]  ;;  %v1931_v27 = vld [vmem:[%s4275_s5 + $0x30] sm:$0xff] }
  0x9e   :  { %v3076_v32 = vpop.permute.xlu1 %390  ;;  %v3078_v33 = vpop.permute.xlu0 %225 }
  0x9f   :  { %1350 = vperm.xlu1 %2480, %v1264_v30   ;;  %1345 = vperm.xlu0 %2479, %v1263_v31  }
  0xa2   :  { %v3086_v36 = vpop.permute.xlu1 %385  ;;  %v3088_v37 = vpop.permute.xlu0 %220 }
  0xa3   :  { %1360 = vperm.xlu1 %2480, %v1266_v34   ;;  %1355 = vperm.xlu0 %2479, %v1265_v35  }
  0xa6   :  { %v3096_v40 = vpop.permute.xlu1 %380  ;;  %v3098_v41 = vpop.permute.xlu0 %215 }
  0xa7   :  { %1370 = vperm.xlu1 %2480, %v1268_v38   ;;  %1365 = vperm.xlu0 %2479, %v1267_v39   ;;  %v1934_v39 = vld [vmem:[%s4275_s5 + $0x48] sm:$0xff] }
  0xaa   :  { %v3106_v44 = vpop.permute.xlu1 %370  ;;  %v3108_v45 = vpop.permute.xlu0 %375 }
  0xab   :  { %1380 = vperm.xlu1 %2480, %v1270_v42   ;;  %1375 = vperm.xlu0 %2479, %v1269_v43   ;;  %v1933_v42 = vld [vmem:[%s4275_s5 + $0x40] sm:$0xff] }
  0xae   :  { %v3116_v48 = vpop.permute.xlu0 %365  ;;  %v3121_v50 = vpop.permute.xlu1 %360 }
  0xaf   :  { %1390 = vperm.xlu1 %2480, %v1272_v46   ;;  %1385 = vperm.xlu0 %2479, %v1271_v47  }
  0xb2   :  { %v3132_v54 = vpop.permute.xlu0 %355  ;;  %v3140_v58 = vpop.permute.xlu1 %350 }
  0xb3   :  { %1400 = vperm.xlu1 %2480, %v1274_v49   ;;  %1395 = vperm.xlu0 %2479, %v1273_v51  }
  0xb6   :  { %v3148_v61 = vpop.permute.xlu0 %345  ;;  %v3150_v62 = vpop.permute.xlu1 %340 }
  0xb7   :  { %1410 = vperm.xlu1 %2480, %v1276_v55   ;;  %1405 = vperm.xlu0 %2479, %v1275_v56   ;;  %v1935_v55 = vld [vmem:[%s4275_s5 + $0x50] sm:$0xff] }
  0xba   :  { %v3158_v1 = vpop.permute.xlu0 %335  ;;  %v3166_v6 = vpop.permute.xlu1 %330 }
  0xbb   :  { %1420 = vperm.xlu1 %2480, %v1278_v59   ;;  %1415 = vperm.xlu0 %2479, %v1277_v60   ;;  %4282 = vst [vmem:[#allocation8_spill] sm:$0xff] %v3166_v6 }
  0xbe   :  { %v3174_v11 = vpop.permute.xlu0 %325  ;;  %v3176_v14 = vpop.permute.xlu1 %315 }
  0xbf   :  { %1430 = vperm.xlu1 %2480, %v1280_v63   ;;  %1425 = vperm.xlu0 %2479, %v1279_v0   ;;  %4283 = vst [vmem:[#allocation9_spill] sm:$0xff] %v3174_v11  ;;  %4284 = vst [vmem:[#allocation10_spill] sm:$0xff] %v3176_v14 }
  0xc2   :  { %v3188_v23 = vpop.permute.xlu0 %320  ;;  %v3200_v34 = vpop.permute.xlu1 %310 }
  0xc3   :  { %1964 = vperm.xlu1 %2480, %v1926_v2   ;;  %1959 = vperm.xlu0 %2479, %v1925_v3   ;;  %4287 = vst [vmem:[#allocation13_spill] sm:$0xff] %v3188_v23  ;;  %4290 = vst [vmem:[#allocation16_spill] sm:$0xff] %v3200_v34  ;;  %v1938_v2 = vld [vmem:[%s4275_s5 + $0x68] sm:$0xff]  ;;  %v1937_v3 = vld [vmem:[%s4275_s5 + $0x60] sm:$0xff] }
  0xc6   :  { %v3216_v47 = vpop.permute.xlu0 %475  ;;  %v3222_v52 = vpop.permute.xlu1 %305 }
  0xc7   :  { %1974 = vperm.xlu1 %2480, %v1928_v7   ;;  %1969 = vperm.xlu0 %2479, %v1927_v10   ;;  %4293 = vst [vmem:[#allocation19_spill] sm:$0xff] %v3216_v47  ;;  %4294 = vst [vmem:[#allocation20_spill] sm:$0xff] %v3222_v52  ;;  %v1941_v52 = vld [vmem:[%s4275_s5 + $0x80] sm:$0xff] }
  0xca   :  { %v3184_v19 = vpop.f32.mrf.mxu0  ;;  %v3186_v22 = vpop.f32.mrf.mxu1 }
  0xcb   :  { %4285 = vst [vmem:[#allocation11_spill] sm:$0xff] %v3184_v19  ;;  %4286 = vst [vmem:[#allocation12_spill] sm:$0xff] %v3186_v22  ;;  %1984 = vperm.xlu1 %2480, %v1930_v15   ;;  %1979 = vperm.xlu0 %2479, %v1929_v18   ;;  %v3238_v0 = vpop.permute.xlu0 %470  ;;  %v3250_v15 = vpop.permute.xlu1 %300  ;;  %v1945_v22 = vld [vmem:[%s4275_s5 + $0xa0] sm:$0xff] }
  0xcc   :  { %v3196_v30 = vpop.f32.mrf.mxu0  ;;  %v3198_v31 = vpop.f32.mrf.mxu1  ;;  %4295 = vst [vmem:[#allocation21_spill] sm:$0xff] %v3238_v0  ;;  %4296 = vst [vmem:[#allocation22_spill] sm:$0xff] %v3250_v15 }
  0xcd   :  { %4288 = vst [vmem:[#allocation14_spill] sm:$0xff] %v3196_v30  ;;  %4289 = vst [vmem:[#allocation15_spill] sm:$0xff] %v3198_v31 }
  0xce   :  { %v3202_v35 = vpop.f32.mrf.mxu0  ;;  %v3204_v38 = vpop.f32.mrf.mxu1 }
  0xcf   :  { %1994 = vperm.xlu1 %2480, %v1932_v26   ;;  %1989 = vperm.xlu0 %2479, %v1931_v27   ;;  %v1940_v27 = vld [vmem:[%s4275_s5 + $0x78] sm:$0xff] }
  0xd0   :  { %v3212_v43 = vpop.f32.mrf.mxu0  ;;  %v3214_v46 = vpop.f32.mrf.mxu1 }
  0xd1   :  { %4291 = vst [vmem:[#allocation17_spill] sm:$0xff] %v3212_v43  ;;  %4292 = vst [vmem:[#allocation18_spill] sm:$0xff] %v3214_v46 }
  0xd2   :  { %v3218_v49 = vpop.f32.mrf.mxu0  ;;  %v3220_v51 = vpop.f32.mrf.mxu1 }
  0xd3   :  { %2004 = vperm.xlu1 %2480, %v1934_v39   ;;  %1999 = vperm.xlu0 %2479, %v1933_v42   ;;  %v1939_v39 = vld [vmem:[%s4275_s5 + $0x70] sm:$0xff] }
  0xd4   :  { %v3230_v56 = vpop.f32.mrf.mxu0  ;;  %v3232_v59 = vpop.f32.mrf.mxu1 }
  0xd6   :  { %v3234_v60 = vpop.f32.mrf.mxu0  ;;  %v3236_v63 = vpop.f32.mrf.mxu1 }
  0xd7   :  { %2014 = vperm.xlu1 %2480, %v1936_v53   ;;  %2009 = vperm.xlu0 %2479, %v1935_v55   ;;  %v3266_v55 = vpop.permute.xlu0 %465 }
  0xd8   :  { %v3246_v7 = vpop.f32.mrf.mxu0  ;;  %v3248_v10 = vpop.f32.mrf.mxu1  ;;  %4297 = vst [vmem:[#allocation23_spill] sm:$0xff] %v3266_v55 }
  0xda   :  { %v3252_v18 = vpop.f32.mrf.mxu0  ;;  %v3254_v26 = vpop.f32.mrf.mxu1 }
  0xdb   :  { %2024 = vperm.xlu1 %2480, %v1938_v2   ;;  %2019 = vperm.xlu0 %2479, %v1937_v3   ;;  %v3268_v2 = vpop.permute.xlu1 %295  ;;  %v1942_v3 = vld [vmem:[%s4275_s5 + $0x88] sm:$0xff] }
  0xdc   :  { %v3262_v42 = vpop.f32.mrf.mxu0  ;;  %v3264_v53 = vpop.f32.mrf.mxu1  ;;  %4298 = vst [vmem:[#allocation24_spill] sm:$0xff] %v3268_v2  ;;  %v1943_v2 = vld [vmem:[%s4275_s5 + $0x90] sm:$0xff] }
  0xde   :  { %v2395_v57 = vpop.f32.mrf.mxu0  ;;  %v2443_v15 = vpop.f32.mrf.mxu1 }
  0xdf   :  { %2034 = vperm.xlu1 %2480, %v1940_v27   ;;  %2029 = vperm.xlu0 %2479, %v1939_v39   ;;  %v3280_v27 = vpop.permute.xlu0 %460  ;;  %v1944_v39 = vld [vmem:[%s4275_s5 + $0x98] sm:$0xff]  ;;  %v3288_v14 = vpop.permute.xlu1 %290 }
  0xe0   :  { %v3276_v0 = vpop.f32.mrf.mxu0  ;;  %v3278_v34 = vpop.f32.mrf.mxu1  ;;  %4299 = vst [vmem:[#allocation25_spill] sm:$0xff] %v3280_v27  ;;  %4300 = vst [vmem:[#allocation26_spill] sm:$0xff] %v3288_v14  ;;  %v1946_v27 = vld [vmem:[%s4275_s5 + $0xa8] sm:$0xff] }
  0xe2   :  { %v2398_v47 = vpop.f32.mrf.mxu0  ;;  %v2446_v55 = vpop.f32.mrf.mxu1 }
  0xe3   :  { %2044 = vperm.xlu1 %2480, %v1942_v3   ;;  %2039 = vperm.xlu0 %2479, %v1941_v52   ;;  %v3298_v9 = vpop.permute.xlu0 %455  ;;  %v3308_v6 = vpop.permute.xlu1 %285 }
  0xe4   :  { %v800_v31 = vpop.f32.mrf.mxu0  ;;  %v960_v23 = vpop.f32.mrf.mxu1  ;;  %4301 = vst [vmem:[#allocation27_spill] sm:$0xff] %v3298_v9 }
  0xe6   :  { %v2401_v30 = vpop.f32.mrf.mxu0  ;;  %v2449_v5 = vpop.f32.mrf.mxu1 }
  0xe7   :  { %2054 = vperm.xlu1 %2480, %v1944_v39   ;;  %2049 = vperm.xlu0 %2479, %v1943_v2   ;;  %v816_v52 = vadd.f32 %v2401_v30, %v3056_v24  ;;  %v976_v3 = vadd.f32 %v2449_v5, %v3066_v28  ;;  %v806_v5 = vadd.f32 %v2398_v47, %v3078_v33 }
  0xe8   :  { %v810_v11 = vpop.f32.mrf.mxu0  ;;  %v970_v19 = vpop.f32.mrf.mxu1  ;;  %v966_v28 = vadd.f32 %v2446_v55, %v3086_v36  ;;  %v4302_v36 = vmov 0.0   ;;  %v956_v47 = vadd.f32 %v2443_v15, %v3108_v45  ;;  %v1949_v45 = vld [vmem:[%s4275_s5 + $0xc0] sm:$0xff] }
  0xe9   :  { %v1074_v14 = vmax.f32 %v816_v52, 0.0  ;;  %v1106_v46 = vmax.f32 %v976_v3, 0.0  ;;  %v811_v2 = vadd.f32 %v810_v11, %v3068_v29  ;;  %v971_v24 = vadd.f32 %v970_v19, %v3076_v32  ;;  %v1948_v19 = vld [vmem:[%s4275_s5 + $0xb8] sm:$0xff]  ;;  %v3338_v52 = vpop.permute.xlu1 %280 }
  0xea   :  { %v3304_v30 = vpop.f32.mrf.mxu0  ;;  %v3306_v39 = vpop.f32.mrf.mxu1  ;;  %v801_v29 = vadd.f32 %v800_v31, %v3088_v37  ;;  %v961_v32 = vadd.f32 %v960_v23, %v3096_v40  ;;  %v1072_v37 = vmax.f32 %v806_v5, 0.0  ;;  %v1104_v40 = vmax.f32 %v966_v28, 0.0 }
  0xeb   :  { %2064 = vperm.xlu1 %2480, %v1946_v27   ;;  %2059 = vperm.xlu0 %2479, %v1945_v22   ;;  %v1073_v43 = vmax.f32 %v811_v2, 0.0  ;;  %v1105_v9 = vmax.f32 %v971_v24, 0.0  ;;  %v3330_v31 = vpop.permute.xlu0 %450  ;;  %v791_v3 = vadd.f32 %v3276_v0, %v3058_v25  ;;  %v946_v2 = vadd.f32 %v3254_v26, %v3116_v48  ;;  %v1281_v26 = vld [vmem:[%s4274_s4 + $0xf0] sm:$0xff] }
  0xec   :  { %1444 = vmatpush1.msra.mxu1 %v1074_v14  ;;  %1669 = vmatpush1.msra.mxu0 %v1106_v46  ;;  %v3312_v11 = vpop.f32.mrf.mxu0  ;;  %v3314_v33 = vpop.f32.mrf.mxu1  ;;  %v1947_v14 = vld [vmem:[%s4275_s5 + $0xb0] sm:$0xff]  ;;  %v796_v46 = vadd.f32 %v2395_v57, %v3098_v41  ;;  %v951_v57 = vadd.f32 %v3278_v34, %v3106_v44  ;;  %v1950_v41 = vld [vmem:[%s4275_s5 + $0xc8] sm:$0xff]  ;;  %v1102_v44 = vmax.f32 %v956_v47, 0.0  ;;  %v786_v34 = vadd.f32 %v3252_v18, %v3046_v20 }
  0xed   :  { %1445 = vmatprep.subr.mxu1 %v4302_v36  ;;  %1670 = vmatprep.subr.mxu0 %v4302_v36  ;;  %v941_v20 = vadd.f32 %v3264_v53, %v3121_v50 }
  0xee   :  { %1446 = vmatpush1.msra.mxu1 %v1073_v43  ;;  %1671 = vmatpush1.msra.mxu0 %v1105_v9  ;;  %v3324_v22 = vpop.f32.mrf.mxu0  ;;  %v3326_v23 = vpop.f32.mrf.mxu1  ;;  %v1071_v43 = vmax.f32 %v801_v29, 0.0  ;;  %v1103_v9 = vmax.f32 %v961_v32, 0.0  ;;  %v1070_v0 = vmax.f32 %v796_v46, 0.0  ;;  %v1069_v29 = vmax.f32 %v791_v3, 0.0 }
  0xef   :  { %1447 = vmatprep.subr.mxu1 %v4302_v36  ;;  %1672 = vmatprep.subr.mxu0 %v4302_v36  ;;  %v3366_v28 = vpop.permute.xlu0 %445  ;;  %v1101_v32 = vmax.f32 %v951_v57, 0.0  ;;  %v1068_v50 = vmax.f32 %v786_v34, 0.0  ;;  %v936_v46 = vadd.f32 %v3236_v63, %v3132_v54  ;;  %v771_v57 = vadd.f32 %v3246_v7, %v3038_v17  ;;  %v1282_v54 = vld [vmem:[%s4274_s4 + $0xf8] sm:$0xff] }
  0xf0   :  { %2074 = vperm.xlu1 %2480, %v1948_v19   ;;  %2069 = vperm.xlu0 %2479, %v1947_v14   ;;  %v3334_v55 = vpop.f32.mrf.mxu0  ;;  %v3336_v27 = vpop.f32.mrf.mxu1  ;;  %v781_v19 = vadd.f32 %v3262_v42, %v3048_v21  ;;  %v1951_v14 = vld [vmem:[%s4275_s5 + $0xd0] sm:$0xff]  ;;  %v1100_v42 = vmax.f32 %v946_v2, 0.0 }
  0xf1   :  { %1448 = vmatpush1.msra.mxu1 %v1072_v37  ;;  %1673 = vmatpush1.msra.mxu0 %v1104_v40  ;;  %v3384_v21 = vpop.permute.xlu1 %275  ;;  %v776_v40 = vadd.f32 %v3234_v60, %v3036_v16  ;;  %v1952_v60 = vld [vmem:[%s4275_s5 + $0xd8] sm:$0xff]  ;;  %v1098_v7 = vmax.f32 %v936_v46, 0.0  ;;  %v1065_v2 = vmax.f32 %v771_v57, 0.0 }
  0xf2   :  { %1449 = vmatprep.subr.mxu1 %v4302_v36  ;;  %1674 = vmatprep.subr.mxu0 %v4302_v36  ;;  %v3352_v15 = vpop.f32.mrf.mxu0  ;;  %v3354_v25 = vpop.f32.mrf.mxu1  ;;  %v1067_v47 = vmax.f32 %v781_v19, 0.0  ;;  %v921_v19 = vadd.f32 %v3232_v59, %v3150_v62 }
  0xf3   :  { %1450 = vmatpush1.msra.mxu1 %v1071_v43  ;;  %1675 = vmatpush1.msra.mxu0 %v1103_v9  ;;  %v1099_v43 = vmax.f32 %v941_v20, 0.0  ;;  %v3404_v16 = vpop.permute.xlu0 %440 }
  0xf4   :  { %1451 = vmatprep.subr.mxu1 %v4302_v36  ;;  %1676 = vmatprep.subr.mxu0 %v4302_v36  ;;  %v3362_v24 = vpop.f32.mrf.mxu0  ;;  %v3364_v5 = vpop.f32.mrf.mxu1 }
  0xf5   :  { %2084 = vperm.xlu1 %2480, %v1950_v41   ;;  %2079 = vperm.xlu0 %2479, %v1949_v45   ;;  %v931_v41 = vadd.f32 %v3248_v10, %v3140_v58  ;;  %v1066_v58 = vmax.f32 %v776_v40, 0.0  ;;  %v3418_v10 = vpop.permute.xlu1 %270  ;;  %v766_v45 = vadd.f32 %v3218_v49, %v3026_v12  ;;  %v1954_v12 = vld [vmem:[%s4275_s5 + $0xe8] sm:$0xff]  ;;  %v1095_v40 = vmax.f32 %v921_v19, 0.0 }
  0xf6   :  { %1452 = vmatpush1.msra.mxu1 %v1070_v0  ;;  %1677 = vmatpush1.msra.mxu0 %v1102_v44  ;;  %v3374_v48 = vpop.f32.mrf.mxu0  ;;  %v3376_v18 = vpop.f32.mrf.mxu1  ;;  %v926_v0 = vadd.f32 %v3220_v51, %v3148_v61  ;;  %v1953_v61 = vld [vmem:[%s4275_s5 + $0xe0] sm:$0xff] }
  0xf7   :  { %1453 = vmatprep.subr.mxu1 %v4302_v36  ;;  %1678 = vmatprep.subr.mxu0 %v4302_v36  ;;  %v1064_v62 = vmax.f32 %v766_v45, 0.0 }
  0xf8   :  { %1454 = vmatpush1.msra.mxu1 %v1069_v29  ;;  %1679 = vmatpush1.msra.mxu0 %v1101_v32  ;;  %v3388_v53 = vpop.f32.mrf.mxu0  ;;  %v3390_v37 = vpop.f32.mrf.mxu1  ;;  %v1097_v29 = vmax.f32 %v931_v41, 0.0  ;;  %v761_v32 = vadd.f32 %v3230_v56, %v3028_v13  ;;  %v1096_v56 = vmax.f32 %v926_v0, 0.0  ;;  %v4304_v41 = vld [vmem:[#allocation8_spill] sm:$0xff] }
  0xf9   :  { %1455 = vmatprep.subr.mxu1 %v4302_v36  ;;  %1680 = vmatprep.subr.mxu0 %v4302_v36  ;;  %v3446_v13 = vpop.permute.xlu0 %435 }
  0xfa   :  { %1435 = vperm.xlu1 %2480, %v1281_v26   ;;  %2089 = vperm.xlu0 %2479, %v1951_v14   ;;  %v3396_v9 = vpop.f32.mrf.mxu0  ;;  %v3398_v3 = vpop.f32.mrf.mxu1  ;;  %v756_v26 = vadd.f32 %v3202_v35, %v3016_v8  ;;  %v916_v14 = vadd.f32 %v3204_v38, %v3158_v1  ;;  %v1956_v1 = vld [vmem:[%s4275_s5 + $0xf8] sm:$0xff]  ;;  %v1955_v35 = vld [vmem:[%s4275_s5 + $0xf0] sm:$0xff] }
  0xfb   :  { %1456 = vmatpush1.msra.mxu1 %v1068_v50  ;;  %1681 = vmatpush1.msra.mxu0 %v1100_v42  ;;  %v3458_v50 = vpop.permute.xlu1 %265  ;;  %v1063_v42 = vmax.f32 %v761_v32, 0.0  ;;  %v4309_v32 = vld [vmem:[#allocation12_spill] sm:$0xff] }
  0xfc   :  { %1457 = vmatprep.subr.mxu1 %v4302_v36  ;;  %1682 = vmatprep.subr.mxu0 %v4302_v36  ;;  %v3414_v17 = vpop.f32.mrf.mxu0  ;;  %v3416_v63 = vpop.f32.mrf.mxu1  ;;  %v1062_v45 = vmax.f32 %v756_v26, 0.0  ;;  %v1094_v0 = vmax.f32 %v916_v14, 0.0  ;;  %v4312_v26 = vld [vmem:[#allocation10_spill] sm:$0xff] }
  0xfd   :  { %1458 = vmatpush1.msra.mxu1 %v1067_v47  ;;  %1683 = vmatpush1.msra.mxu0 %v1099_v43  ;;  %v4303_v43 = vld [vmem:[#allocation17_spill] sm:$0xff] }
  0xfe   :  { %1459 = vmatprep.subr.mxu1 %v4302_v36  ;;  %1684 = vmatprep.subr.mxu0 %v4302_v36  ;;  %v3426_v44 = vpop.f32.mrf.mxu0  ;;  %v3428_v34 = vpop.f32.mrf.mxu1  ;;  %v751_v57 = vadd.f32 %v4303_v43, %v3006_v4  ;;  %v4306_v4 = vld [vmem:[#allocation7_spill] sm:$0xff] }
  0xff   :  { %1440 = vperm.xlu1 %2480, %v1282_v54   ;;  %2094 = vperm.xlu0 %2479, %v1952_v60   ;;  %v4305_v54 = vld [vmem:[#allocation18_spill] sm:$0xff]  ;;  %v3484_v43 = vpop.permute.xlu1 %260 }
 0x100   :  { %1460 = vmatpush1.msra.mxu1 %v1066_v58  ;;  %1685 = vmatpush1.msra.mxu0 %v1098_v7  ;;  %v3442_v49 = vpop.f32.mrf.mxu0  ;;  %v3444_v51 = vpop.f32.mrf.mxu1  ;;  %v911_v8 = vadd.f32 %v4305_v54, %v4304_v41  ;;  %v4307_v58 = vld [vmem:[#allocation11_spill] sm:$0xff]  ;;  %v4313_v54 = vld [vmem:[#allocation13_spill] sm:$0xff] }
 0x101   :  { %1461 = vmatprep.subr.mxu1 %v4302_v36  ;;  %1686 = vmatprep.subr.mxu0 %v4302_v36  ;;  %v746_v7 = vadd.f32 %v4307_v58, %v4306_v4  ;;  %v4314_v4 = vld [vmem:[#allocation15_spill] sm:$0xff] }
 0x102   :  { %1462 = vmatpush1.msra.mxu1 %v1065_v2  ;;  %1687 = vmatpush1.msra.mxu0 %v1097_v29  ;;  %v3450_v59 = vpop.f32.mrf.mxu0  ;;  %v3452_v20 = vpop.f32.mrf.mxu1  ;;  %v4308_v29 = vld [vmem:[#allocation9_spill] sm:$0xff]  ;;  %v901_v58 = vadd.f32 %v4314_v4, %v4313_v54 }
 0x103   :  { %1463 = vmatprep.subr.mxu1 %v4302_v36  ;;  %1688 = vmatprep.subr.mxu0 %v4302_v36  ;;  %v3476_v2 = vpop.permute.xlu0 %430  ;;  %v906_v19 = vadd.f32 %v4309_v32, %v4308_v29  ;;  %v2219_v29 = vld [vmem:[#allocation2] sm:$0x1]  ;;  %v1060_v32 = vmax.f32 %v746_v7, 0.0  ;;  %v3499_v7 = vpop.permute.xlu1 %255 }
 0x104   :  { %2104 = vperm.xlu1 %2480, %v1954_v12   ;;  %2099 = vperm.xlu0 %2479, %v1953_v61   ;;  %v880_v46 = vpop.f32.mrf.mxu0  ;;  %v3460_v47 = vpop.f32.mrf.mxu1  ;;  %v4310_v61 = vld [vmem:[#allocation6_spill] sm:$0xff] }
 0x105   :  { %1464 = vmatpush1.msra.mxu1 %v1064_v62  ;;  %1689 = vmatpush1.msra.mxu0 %v1096_v56  ;;  %v4311_v62 = vld [vmem:[#allocation14_spill] sm:$0xff] }
 0x106   :  { %1465 = vmatprep.subr.mxu1 %v4302_v36  ;;  %1690 = vmatprep.subr.mxu0 %v4302_v36  ;;  %v2425_v38 = vpop.f32.mrf.mxu0  ;;  %v2473_v60 = vpop.f32.mrf.mxu1  ;;  %v741_v56 = vadd.f32 %v4311_v62, %v4310_v61 }
 0x107   :  { %1466 = vmatpush1.msra.mxu1 %v1063_v42  ;;  %1691 = vmatpush1.msra.mxu0 %v1095_v40  ;;  %v1061_v42 = vmax.f32 %v751_v57, 0.0  ;;  %v1093_v40 = vmax.f32 %v911_v8, 0.0  ;;  %v896_v14 = vadd.f32 %v2425_v38, %v4312_v26  ;;  %v4316_v57 = vld [vmem:[#allocation16_spill] sm:$0xff]  ;;  %v4317_v38 = vld [vmem:[#allocation21_spill] sm:$0xff]  ;;  %v3496_v62 = vpop.permute.xlu0 %425 }
 0x108   :  { %1467 = vmatprep.subr.mxu1 %v4302_v36  ;;  %1692 = vmatprep.subr.mxu0 %v4302_v36  ;;  %v890_v12 = vpop.f32.mrf.mxu0  ;;  %v1050_v41 = vpop.f32.mrf.mxu1  ;;  %v1059_v61 = vmax.f32 %v741_v56, 0.0  ;;  %v4319_v56 = vld [vmem:[#allocation23_spill] sm:$0xff] }
 0x109   :  { %2114 = vperm.xlu1 %2480, %v1956_v1   ;;  %2109 = vperm.xlu0 %2479, %v1955_v35   ;;  %v4315_v1 = vld [vmem:[#allocation19_spill] sm:$0xff]  ;;  %v891_v8 = vadd.f32 %v890_v12, %v4316_v57  ;;  %v1090_v26 = vmax.f32 %v896_v14, 0.0 }
 0x10a   :  { %1468 = vmatpush1.msra.mxu1 %v1062_v45  ;;  %1693 = vmatpush1.msra.mxu0 %v1094_v0  ;;  %v1056_v35 = vadd.f32 %v2473_v60, %v4315_v1  ;;  %v1092_v45 = vmax.f32 %v906_v19, 0.0  ;;  %v1051_v0 = vadd.f32 %v1050_v41, %v4317_v38  ;;  %v1091_v60 = vmax.f32 %v901_v58, 0.0  ;;  %v4318_v19 = vld [vmem:[#allocation20_spill] sm:$0xff]  ;;  %v4320_v41 = vld [vmem:[#allocation22_spill] sm:$0xff]  ;;  %v4321_v58 = vld [vmem:[#allocation25_spill] sm:$0xff] }
 0x10b   :  { %1469 = vmatprep.subr.mxu1 %v4302_v36  ;;  %1694 = vmatprep.subr.mxu0 %v4302_v36  ;;  %v886_v12 = vadd.f32 %v3450_v59, %v4318_v19  ;;  %v881_v4 = vadd.f32 %v880_v46, %v4320_v41  ;;  %v1041_v1 = vadd.f32 %v3460_v47, %v4321_v58  ;;  %v3512_v59 = vpop.permute.xlu0 %420  ;;  %v3520_v47 = vpop.permute.xlu1 %250 }
 0x10c   :  { %1470 = vmatpush1.msra.mxu1 %v1061_v42  ;;  %1695 = vmatpush1.msra.mxu0 %v1093_v40  ;;  %v1122_v54 = vmax.f32 %v1056_v35, 0.0  ;;  %v1089_v42 = vmax.f32 %v891_v8, 0.0  ;;  %v1046_v40 = vadd.f32 %v3452_v20, %v4319_v56  ;;  %v1121_v14 = vmax.f32 %v1051_v0, 0.0  ;;  %v4322_v35 = vld [vmem:[#allocation24_spill] sm:$0xff]  ;;  %v4324_v8 = vld [vmem:[#allocation26_spill] sm:$0xff] }
 0x10d   :  { %1471 = vmatprep.subr.mxu1 %v4302_v36  ;;  %1696 = vmatprep.subr.mxu0 %v4302_v36  ;;  %v876_v20 = vadd.f32 %v3426_v44, %v4322_v35  ;;  %v1087_v38 = vmax.f32 %v881_v4, 0.0  ;;  %v1031_v44 = vadd.f32 %v3444_v51, %v3330_v31  ;;  %v1119_v0 = vmax.f32 %v1041_v1, 0.0  ;;  %v1125_v35 = vld [vmem:[%s4273_s3 + $0x10] sm:$0xff] }
 0x10e   :  { %2222 = vperm.xlu0 %2479, %v2219_v29   ;;  %1472 = vmatpush1.msra.mxu1 %v1060_v32  ;;  %v1088_v29 = vmax.f32 %v886_v12, 0.0  ;;  %v4323_v32 = vld [vmem:[#allocation27_spill] sm:$0xff]  ;;  %v1120_v57 = vmax.f32 %v1046_v40, 0.0  ;;  %v861_v31 = vadd.f32 %v3414_v17, %v3338_v52  ;;  %v1016_v52 = vadd.f32 %v3376_v18, %v3446_v13 }
 0x10f   :  { %1697 = vmatpush1.msra.mxu0 %v1092_v45  ;;  %1473 = vmatprep.subr.mxu1 %v4302_v36  ;;  %v1036_v46 = vadd.f32 %v3428_v34, %v4323_v32  ;;  %v871_v45 = vadd.f32 %v3442_v49, %v4324_v8  ;;  %v866_v34 = vadd.f32 %v3396_v9, %v3308_v6  ;;  %v1117_v9 = vmax.f32 %v1031_v44, 0.0  ;;  %v1127_v32 = vld [vmem:[%s4273_s3 + $0x20] sm:$0xff]  ;;  %v1133_v8 = vld [vmem:[%s4273_s3 + $0x50] sm:$0xff] }
 0x110   :  { %1698 = vmatprep.subr.mxu0 %v4302_v36  ;;  %1474 = vmatpush1.msra.mxu1 %v1059_v61  ;;  %v1086_v61 = vmax.f32 %v876_v20, 0.0  ;;  %v1026_v49 = vadd.f32 %v3398_v3, %v3366_v28  ;;  %v1021_v6 = vadd.f32 %v3416_v63, %v3404_v16  ;;  %v246_v28 = vpop.permute.xlu1 %245  ;;  %v856_v3 = vadd.f32 %v3374_v48, %v3384_v21  ;;  %v1128_v20 = vld [vmem:[%s4273_s3 + $0x28] sm:$0xff]  ;;  %v1135_v44 = vld [vmem:[%s4273_s3 + $0x60] sm:$0xff] }
 0x111   :  { %1699 = vmatpush1.msra.mxu0 %v1091_v60  ;;  %1475 = vmatprep.subr.mxu1 %v4302_v36  ;;  %v416_v60 = vpop.permute.xlu0 %415  ;;  %v1085_v51 = vmax.f32 %v871_v45, 0.0  ;;  %v851_v16 = vadd.f32 %v3388_v53, %v3418_v10  ;;  %v1083_v63 = vmax.f32 %v861_v31, 0.0  ;;  %v1011_v48 = vadd.f32 %v3390_v37, %v3476_v2  ;;  %v1136_v45 = vld [vmem:[%s4273_s3 + $0x68] sm:$0xff]  ;;  %v1146_v31 = vld [vmem:[%s4273_s3 + $0xb8] sm:$0xff] }
 0x112   :  { %1700 = vmatprep.subr.mxu0 %v4302_v36  ;;  %1476 = vmatpush2.msra.mxu1 %v1090_v26  ;;  %v1118_v26 = vmax.f32 %v1036_v46, 0.0  ;;  %v1116_v17 = vmax.f32 %v1026_v49, 0.0  ;;  %v1115_v21 = vmax.f32 %v1021_v6, 0.0  ;;  %v846_v18 = vadd.f32 %v3352_v15, %v3458_v50  ;;  %v1129_v46 = vld [vmem:[%s4273_s3 + $0x30] sm:$0xff]  ;;  %v1139_v49 = vld [vmem:[%s4273_s3 + $0x80] sm:$0xff] }
 0x113   :  { %1701 = vmatpush2.msra.mxu0 %v1122_v54  ;;  %1477 = vmatprep.subr.mxu1 %v4302_v36  ;;  %v1084_v54 = vmax.f32 %v866_v34, 0.0  ;;  %v1082_v13 = vmax.f32 %v856_v3, 0.0  ;;  %v1006_v53 = vadd.f32 %v3354_v25, %v3496_v62  ;;  %v1114_v10 = vmax.f32 %v1016_v52, 0.0  ;;  %v1140_v34 = vld [vmem:[%s4273_s3 + $0x88] sm:$0xff]  ;;  %v1145_v6 = vld [vmem:[%s4273_s3 + $0xb0] sm:$0xff]  ;;  %v1147_v3 = vld [vmem:[%s4273_s3 + $0xc0] sm:$0xff] }
 0x114   :  { %1702 = vmatprep.subr.mxu0 %v4302_v36  ;;  %1478 = vmatpush2.msra.mxu1 %v1089_v42  ;;  %v841_v37 = vadd.f32 %v3362_v24, %v3484_v43  ;;  %v1081_v2 = vmax.f32 %v851_v16, 0.0  ;;  %v241_v12 = vpop.permute.xlu1 %240  ;;  %v1001_v15 = vadd.f32 %v3364_v5, %v3512_v59  ;;  %v1113_v50 = vmax.f32 %v1011_v48, 0.0  ;;  %v1152_v52 = vld [vmem:[%s4273_s3 + $0xe8] sm:$0xff]  ;;  %v1151_v16 = vld [vmem:[%s4273_s3 + $0xe0] sm:$0xff] }
 0x115   :  { %1703 = vmatpush2.msra.mxu0 %v1121_v14  ;;  %1479 = vmatprep.subr.mxu1 %v4302_v36  ;;  %v411_v19 = vpop.permute.xlu0 %410  ;;  %v836_v25 = vadd.f32 %v3324_v22, %v3499_v7  ;;  %v1080_v62 = vmax.f32 %v846_v18, 0.0  ;;  %v1112_v24 = vmax.f32 %v1006_v53, 0.0  ;;  %v996_v43 = vadd.f32 %v3326_v23, %v416_v60  ;;  %v1144_v60 = vld [vmem:[%s4273_s3 + $0xa8] sm:$0xff]  ;;  %v1155_v18 = vld [vmem:[%s4273_s3 + $0x100] sm:$0xff]  ;;  %v1162_v53 = vld [vmem:[%s4273_s3 + $0x138] sm:$0xff] }
 0x116   :  { %1704 = vmatprep.subr.mxu0 %v4302_v36  ;;  %1480 = vmatpush2.msra.mxu1 %v1088_v29  ;;  %v831_v5 = vadd.f32 %v3334_v55, %v3520_v47  ;;  %v1079_v42 = vmax.f32 %v841_v37, 0.0  ;;  %v1111_v40 = vmax.f32 %v1001_v15, 0.0  ;;  %v991_v22 = vadd.f32 %v3336_v27, %v411_v19  ;;  %v1130_v29 = vld [vmem:[%s4273_s3 + $0x38] sm:$0xff]  ;;  %v1131_v47 = vld [vmem:[%s4273_s3 + $0x40] sm:$0xff]  ;;  %v1156_v48 = vld [vmem:[%s4273_s3 + $0x108] sm:$0xff] }
 0x117   :  { %1705 = vmatpush2.msra.mxu0 %v1120_v57  ;;  %1481 = vmatprep.subr.mxu1 %v4302_v36  ;;  %v1078_v7 = vmax.f32 %v836_v25, 0.0  ;;  %v826_v23 = vadd.f32 %v3304_v30, %v246_v28  ;;  %v1110_v41 = vmax.f32 %v996_v43, 0.0  ;;  %v821_v58 = vadd.f32 %v3312_v11, %v241_v12  ;;  %v1123_v11 = vld [vmem:[%s4273_s3] sm:$0xff]  ;;  %v1134_v57 = vld [vmem:[%s4273_s3 + $0x58] sm:$0xff]  ;;  %v1160_v19 = vld [vmem:[%s4273_s3 + $0x128] sm:$0xff] }
 0x118   :  { %1706 = vmatprep.subr.mxu0 %v4302_v36  ;;  %1482 = vmatpush2.msra.mxu1 %v1087_v38  ;;  %v401_v14 = vpop.permute.xlu1 %400  ;;  %v1077_v4 = vmax.f32 %v831_v5, 0.0  ;;  %v1109_v27 = vmax.f32 %v991_v22, 0.0  ;;  %v1138_v38 = vld [vmem:[%s4273_s3 + $0x78] sm:$0xff]  ;;  %v1161_v37 = vld [vmem:[%s4273_s3 + $0x130] sm:$0xff]  ;;  %v1163_v15 = vld [vmem:[%s4273_s3 + $0x140] sm:$0xff] }
 0x119   :  { %1707 = vmatpush2.msra.mxu0 %v1119_v0  ;;  %1483 = vmatprep.subr.mxu1 %v4302_v36  ;;  %v406_v56 = vpop.permute.xlu0 %405  ;;  %v981_v1 = vadd.f32 %v3314_v33, %v401_v14  ;;  %v1076_v30 = vmax.f32 %v826_v23, 0.0  ;;  %v1075_v59 = vmax.f32 %v821_v58, 0.0  ;;  %v1137_v0 = vld [vmem:[%s4273_s3 + $0x70] sm:$0xff]  ;;  %v1150_v28 = vld [vmem:[%s4273_s3 + $0xd8] sm:$0xff]  ;;  %v1168_v25 = vld [vmem:[%s4273_s3 + $0x168] sm:$0xff] }
 0x11a   :  { %1708 = vmatprep.subr.mxu0 %v4302_v36  ;;  %1484 = vmatpush2.msra.mxu1 %v1086_v61  ;;  %v986_v55 = vadd.f32 %v3306_v39, %v406_v56  ;;  %v1142_v61 = vld [vmem:[%s4273_s3 + $0x98] sm:$0xff]  ;;  %v1169_v43 = vld [vmem:[%s4273_s3 + $0x170] sm:$0xff]  ;;  %v1172_v5 = vld [vmem:[%s4273_s3 + $0x188] sm:$0xff] }
 0x11b   :  { %1709 = vmatpush2.msra.mxu0 %v1118_v26  ;;  %1485 = vmatprep.subr.mxu1 %v4302_v36  ;;  %v1107_v33 = vmax.f32 %v981_v1, 0.0  ;;  %v1141_v26 = vld [vmem:[%s4273_s3 + $0x90] sm:$0xff]  ;;  %v1166_v12 = vld [vmem:[%s4273_s3 + $0x158] sm:$0xff]  ;;  %v1171_v56 = vld [vmem:[%s4273_s3 + $0x180] sm:$0xff] }
 0x11c   :  { %1710 = vmatprep.subr.mxu0 %v4302_v36  ;;  %1486 = vmatpush2.msra.mxu1 %v1085_v51  ;;  %v1108_v39 = vmax.f32 %v986_v55, 0.0  ;;  %v1143_v51 = vld [vmem:[%s4273_s3 + $0xa0] sm:$0xff]  ;;  %v1176_v22 = vld [vmem:[%s4273_s3 + $0x1a8] sm:$0xff]  ;;  %v1177_v14 = vld [vmem:[%s4273_s3 + $0x1b0] sm:$0xff] }
 0x11d   :  { %1711 = vmatpush2.msra.mxu0 %v1117_v9  ;;  %1487 = vmatprep.subr.mxu1 %v4302_v36  ;;  %v1148_v9 = vld [vmem:[%s4273_s3 + $0xc8] sm:$0xff]  ;;  %v1175_v23 = vld [vmem:[%s4273_s3 + $0x1a0] sm:$0xff]  ;;  %v1182_v55 = vld [vmem:[%s4273_s3 + $0x1d8] sm:$0xff] }
 0x11e   :  { %1712 = vmatprep.subr.mxu0 %v4302_v36  ;;  %1488 = vmatpush2.msra.mxu1 %v1084_v54  ;;  %v1149_v54 = vld [vmem:[%s4273_s3 + $0xd0] sm:$0xff]  ;;  %v1186_v1 = vld [vmem:[%s4273_s3 + $0x1f8] sm:$0xff] }
 0x11f   :  { %1713 = vmatpush2.msra.mxu0 %v1116_v17  ;;  %1489 = vmatprep.subr.mxu1 %v4302_v36  ;;  %v1154_v17 = vld [vmem:[%s4273_s3 + $0xf8] sm:$0xff]  ;;  %v1181_v58 = vld [vmem:[%s4273_s3 + $0x1d0] sm:$0xff] }
 0x120   :  { %1714 = vmatprep.subr.mxu0 %v4302_v36  ;;  %1490 = vmatpush2.msra.mxu1 %v1083_v63  ;;  %v1153_v63 = vld [vmem:[%s4273_s3 + $0xf0] sm:$0xff] }
 0x121   :  { %1715 = vmatpush2.msra.mxu0 %v1115_v21  ;;  %1491 = vmatprep.subr.mxu1 %v4302_v36  ;;  %v1158_v21 = vld [vmem:[%s4273_s3 + $0x118] sm:$0xff] }
 0x122   :  { %1716 = vmatprep.subr.mxu0 %v4302_v36  ;;  %1492 = vmatpush2.msra.mxu1 %v1082_v13  ;;  %v1157_v13 = vld [vmem:[%s4273_s3 + $0x110] sm:$0xff] }
 0x123   :  { %1717 = vmatpush2.msra.mxu0 %v1114_v10  ;;  %1493 = vmatprep.subr.mxu1 %v4302_v36  ;;  %v1159_v10 = vld [vmem:[%s4273_s3 + $0x120] sm:$0xff] }
 0x124   :  { %1718 = vmatprep.subr.mxu0 %v4302_v36  ;;  %1494 = vmatpush2.msra.mxu1 %v1081_v2  ;;  %v1164_v2 = vld [vmem:[%s4273_s3 + $0x148] sm:$0xff] }
 0x125   :  { %1719 = vmatpush2.msra.mxu0 %v1113_v50  ;;  %1495 = vmatprep.subr.mxu1 %v4302_v36  ;;  %v1165_v50 = vld [vmem:[%s4273_s3 + $0x150] sm:$0xff] }
 0x126   :  { %1720 = vmatprep.subr.mxu0 %v4302_v36  ;;  %1496 = vmatpush2.msra.mxu1 %v1080_v62  ;;  %v1170_v62 = vld [vmem:[%s4273_s3 + $0x178] sm:$0xff] }
 0x127   :  { %1721 = vmatpush2.msra.mxu0 %v1112_v24  ;;  %1497 = vmatprep.subr.mxu1 %v4302_v36  ;;  %v1167_v24 = vld [vmem:[%s4273_s3 + $0x160] sm:$0xff] }
 0x128   :  { %1722 = vmatprep.subr.mxu0 %v4302_v36  ;;  %1498 = vmatpush2.msra.mxu1 %v1079_v42  ;;  %v1174_v42 = vld [vmem:[%s4273_s3 + $0x198] sm:$0xff] }
 0x129   :  { %1723 = vmatpush2.msra.mxu0 %v1111_v40  ;;  %1499 = vmatprep.subr.mxu1 %v4302_v36  ;;  %v1173_v40 = vld [vmem:[%s4273_s3 + $0x190] sm:$0xff] }
 0x12a   :  { %1724 = vmatprep.subr.mxu0 %v4302_v36  ;;  %1500 = vmatpush2.msra.mxu1 %v1078_v7  ;;  %v1178_v7 = vld [vmem:[%s4273_s3 + $0x1b8] sm:$0xff] }
 0x12b   :  { %1725 = vmatpush2.msra.mxu0 %v1110_v41  ;;  %1501 = vmatprep.subr.mxu1 %v4302_v36  ;;  %v1180_v41 = vld [vmem:[%s4273_s3 + $0x1c8] sm:$0xff] }
 0x12c   :  { %1726 = vmatprep.subr.mxu0 %v4302_v36  ;;  %1502 = vmatpush2.msra.mxu1 %v1077_v4  ;;  %v1179_v4 = vld [vmem:[%s4273_s3 + $0x1c0] sm:$0xff] }
 0x12d   :  { %1727 = vmatpush2.msra.mxu0 %v1109_v27  ;;  %1503 = vmatprep.subr.mxu1 %v4302_v36  ;;  %v1184_v27 = vld [vmem:[%s4273_s3 + $0x1e8] sm:$0xff] }
 0x12e   :  { %1728 = vmatprep.subr.mxu0 %v4302_v36  ;;  %1504 = vmatpush2.msra.mxu1 %v1076_v30  ;;  %v1183_v30 = vld [vmem:[%s4273_s3 + $0x1e0] sm:$0xff] }
 0x12f   :  { %1729 = vmatpush2.msra.mxu0 %v1108_v39  ;;  %1505 = vmatprep.subr.mxu1 %v4302_v36  ;;  %v1185_v39 = vld [vmem:[%s4273_s3 + $0x1f0] sm:$0xff] }
 0x130   :  { %1730 = vmatprep.subr.mxu0 %v4302_v36  ;;  %1506 = vmatpush2.msra.mxu1 %v1075_v59  ;;  %v1132_v36 = vld [vmem:[%s4273_s3 + $0x48] sm:$0xff] }
 0x131   :  { %1731 = vmatpush2.msra.mxu0 %v1107_v33  ;;  %1508 = vmatmul.mubr.f32.vlgmr.msra.gmra.mxu1 %v1123_v11  ;;  %v1188_v59 = vld [vmem:[%s4273_s3 + $0x208] sm:$0xff]  ;;  %v1190_v11 = vld [vmem:[%s4273_s3 + $0x218] sm:$0xff]  ;;  %v1187_v33 = vld [vmem:[%s4273_s3 + $0x200] sm:$0xff] }
 0x132   :  { %1733 = vmatmul.mubr.f32.vlgmr.msra.gmra.mxu0 %v1125_v35  ;;  %1512 = vmatprep.mubr.f32.mxu1 %v1128_v20  ;;  %v1189_v35 = vld [vmem:[%s4273_s3 + $0x210] sm:$0xff]  ;;  %v1192_v20 = vld [vmem:[%s4273_s3 + $0x228] sm:$0xff] }
 0x133   :  { %1737 = vmatprep.mubr.f32.mxu0 %v1130_v29  ;;  %v1194_v29 = vld [vmem:[%s4273_s3 + $0x238] sm:$0xff] }
 0x135   :  { %1513 = vmatmul.mubr.f32.gmra.mxu1 %v1127_v32  ;;  %v1191_v32 = vld [vmem:[%s4273_s3 + $0x220] sm:$0xff] }
 0x136   :  { %1738 = vmatmul.mubr.f32.gmra.mxu0 %v1129_v46  ;;  %1517 = vmatprep.mubr.f32.mxu1 %v1132_v36  ;;  %v1193_v46 = vld [vmem:[%s4273_s3 + $0x230] sm:$0xff]  ;;  %v1196_v36 = vld [vmem:[%s4273_s3 + $0x248] sm:$0xff] }
 0x137   :  { %1742 = vmatprep.mubr.f32.mxu0 %v1134_v57  ;;  %v1198_v57 = vld [vmem:[%s4273_s3 + $0x258] sm:$0xff] }
 0x139   :  { %1518 = vmatmul.mubr.f32.gmra.mxu1 %v1131_v47  ;;  %v1195_v47 = vld [vmem:[%s4273_s3 + $0x240] sm:$0xff] }
 0x13a   :  { %1743 = vmatmul.mubr.f32.gmra.mxu0 %v1133_v8  ;;  %1522 = vmatprep.mubr.f32.mxu1 %v1136_v45  ;;  %v1197_v8 = vld [vmem:[%s4273_s3 + $0x250] sm:$0xff]  ;;  %v1200_v45 = vld [vmem:[%s4273_s3 + $0x268] sm:$0xff] }
 0x13b   :  { %1747 = vmatprep.mubr.f32.mxu0 %v1138_v38  ;;  %v1202_v38 = vld [vmem:[%s4273_s3 + $0x278] sm:$0xff] }
 0x13d   :  { %1523 = vmatmul.mubr.f32.gmra.mxu1 %v1135_v44  ;;  %v1199_v44 = vld [vmem:[%s4273_s3 + $0x260] sm:$0xff] }
 0x13e   :  { %1748 = vmatmul.mubr.f32.gmra.mxu0 %v1137_v0  ;;  %1527 = vmatprep.mubr.f32.mxu1 %v1140_v34  ;;  %v1201_v0 = vld [vmem:[%s4273_s3 + $0x270] sm:$0xff]  ;;  %v1204_v34 = vld [vmem:[%s4273_s3 + $0x288] sm:$0xff] }
 0x13f   :  { %1752 = vmatprep.mubr.f32.mxu0 %v1142_v61  ;;  %v1206_v61 = vld [vmem:[%s4273_s3 + $0x298] sm:$0xff] }
 0x141   :  { %1528 = vmatmul.mubr.f32.gmra.mxu1 %v1139_v49  ;;  %v1203_v49 = vld [vmem:[%s4273_s3 + $0x280] sm:$0xff] }
 0x142   :  { %1753 = vmatmul.mubr.f32.gmra.mxu0 %v1141_v26  ;;  %1532 = vmatprep.mubr.f32.mxu1 %v1144_v60  ;;  %v1205_v26 = vld [vmem:[%s4273_s3 + $0x290] sm:$0xff]  ;;  %v1208_v60 = vld [vmem:[%s4273_s3 + $0x2a8] sm:$0xff] }
 0x143   :  { %1757 = vmatprep.mubr.f32.mxu0 %v1146_v31  ;;  %v1210_v31 = vld [vmem:[%s4273_s3 + $0x2b8] sm:$0xff] }
 0x145   :  { %1533 = vmatmul.mubr.f32.gmra.mxu1 %v1143_v51  ;;  %v1207_v51 = vld [vmem:[%s4273_s3 + $0x2a0] sm:$0xff] }
 0x146   :  { %1758 = vmatmul.mubr.f32.gmra.mxu0 %v1145_v6  ;;  %1537 = vmatprep.mubr.f32.mxu1 %v1148_v9  ;;  %v1209_v6 = vld [vmem:[%s4273_s3 + $0x2b0] sm:$0xff]  ;;  %v1212_v9 = vld [vmem:[%s4273_s3 + $0x2c8] sm:$0xff] }
 0x147   :  { %1762 = vmatprep.mubr.f32.mxu0 %v1150_v28  ;;  %v1214_v28 = vld [vmem:[%s4273_s3 + $0x2d8] sm:$0xff] }
 0x149   :  { %1538 = vmatmul.mubr.f32.gmra.mxu1 %v1147_v3  ;;  %v1211_v3 = vld [vmem:[%s4273_s3 + $0x2c0] sm:$0xff] }
 0x14a   :  { %1763 = vmatmul.mubr.f32.gmra.mxu0 %v1149_v54  ;;  %1542 = vmatprep.mubr.f32.mxu1 %v1152_v52  ;;  %v1213_v54 = vld [vmem:[%s4273_s3 + $0x2d0] sm:$0xff]  ;;  %v1216_v52 = vld [vmem:[%s4273_s3 + $0x2e8] sm:$0xff] }
 0x14b   :  { %1767 = vmatprep.mubr.f32.mxu0 %v1154_v17  ;;  %v1218_v17 = vld [vmem:[%s4273_s3 + $0x2f8] sm:$0xff] }
 0x14d   :  { %1543 = vmatmul.mubr.f32.gmra.mxu1 %v1151_v16  ;;  %v1215_v16 = vld [vmem:[%s4273_s3 + $0x2e0] sm:$0xff] }
 0x14e   :  { %1768 = vmatmul.mubr.f32.gmra.mxu0 %v1153_v63  ;;  %1547 = vmatprep.mubr.f32.mxu1 %v1156_v48  ;;  %v1217_v63 = vld [vmem:[%s4273_s3 + $0x2f0] sm:$0xff]  ;;  %v1220_v48 = vld [vmem:[%s4273_s3 + $0x308] sm:$0xff] }
 0x14f   :  { %1772 = vmatprep.mubr.f32.mxu0 %v1158_v21  ;;  %v1222_v21 = vld [vmem:[%s4273_s3 + $0x318] sm:$0xff] }
 0x151   :  { %1548 = vmatmul.mubr.f32.gmra.mxu1 %v1155_v18  ;;  %v1219_v18 = vld [vmem:[%s4273_s3 + $0x300] sm:$0xff] }
 0x152   :  { %1773 = vmatmul.mubr.f32.gmra.mxu0 %v1157_v13  ;;  %1552 = vmatprep.mubr.f32.mxu1 %v1160_v19  ;;  %v1221_v13 = vld [vmem:[%s4273_s3 + $0x310] sm:$0xff]  ;;  %v1224_v19 = vld [vmem:[%s4273_s3 + $0x328] sm:$0xff] }
 0x153   :  { %1777 = vmatprep.mubr.f32.mxu0 %v1162_v53  ;;  %v1226_v53 = vld [vmem:[%s4273_s3 + $0x338] sm:$0xff] }
 0x155   :  { %1553 = vmatmul.mubr.f32.gmra.mxu1 %v1159_v10  ;;  %v1223_v10 = vld [vmem:[%s4273_s3 + $0x320] sm:$0xff] }
 0x156   :  { %1778 = vmatmul.mubr.f32.gmra.mxu0 %v1161_v37  ;;  %1557 = vmatprep.mubr.f32.mxu1 %v1164_v2  ;;  %v1225_v37 = vld [vmem:[%s4273_s3 + $0x330] sm:$0xff]  ;;  %v1228_v2 = vld [vmem:[%s4273_s3 + $0x348] sm:$0xff] }
 0x157   :  { %1782 = vmatprep.mubr.f32.mxu0 %v1166_v12  ;;  %v1230_v12 = vld [vmem:[%s4273_s3 + $0x358] sm:$0xff] }
 0x159   :  { %1558 = vmatmul.mubr.f32.gmra.mxu1 %v1163_v15  ;;  %v1227_v15 = vld [vmem:[%s4273_s3 + $0x340] sm:$0xff] }
 0x15a   :  { %1783 = vmatmul.mubr.f32.gmra.mxu0 %v1165_v50  ;;  %1562 = vmatprep.mubr.f32.mxu1 %v1168_v25  ;;  %v1229_v50 = vld [vmem:[%s4273_s3 + $0x350] sm:$0xff]  ;;  %v1232_v25 = vld [vmem:[%s4273_s3 + $0x368] sm:$0xff] }
 0x15b   :  { %1787 = vmatprep.mubr.f32.mxu0 %v1170_v62  ;;  %v1234_v62 = vld [vmem:[%s4273_s3 + $0x378] sm:$0xff] }
 0x15d   :  { %1563 = vmatmul.mubr.f32.gmra.mxu1 %v1167_v24  ;;  %v1231_v24 = vld [vmem:[%s4273_s3 + $0x360] sm:$0xff] }
 0x15e   :  { %1788 = vmatmul.mubr.f32.gmra.mxu0 %v1169_v43  ;;  %1567 = vmatprep.mubr.f32.mxu1 %v1172_v5  ;;  %v1233_v43 = vld [vmem:[%s4273_s3 + $0x370] sm:$0xff]  ;;  %v1236_v5 = vld [vmem:[%s4273_s3 + $0x388] sm:$0xff] }
 0x15f   :  { %1792 = vmatprep.mubr.f32.mxu0 %v1174_v42  ;;  %v1238_v42 = vld [vmem:[%s4273_s3 + $0x398] sm:$0xff] }
 0x161   :  { %1568 = vmatmul.mubr.f32.gmra.mxu1 %v1171_v56  ;;  %v1235_v56 = vld [vmem:[%s4273_s3 + $0x380] sm:$0xff] }
 0x162   :  { %1793 = vmatmul.mubr.f32.gmra.mxu0 %v1173_v40  ;;  %1572 = vmatprep.mubr.f32.mxu1 %v1176_v22  ;;  %v1237_v40 = vld [vmem:[%s4273_s3 + $0x390] sm:$0xff]  ;;  %v1240_v22 = vld [vmem:[%s4273_s3 + $0x3a8] sm:$0xff] }
 0x163   :  { %1797 = vmatprep.mubr.f32.mxu0 %v1178_v7  ;;  %v1242_v7 = vld [vmem:[%s4273_s3 + $0x3b8] sm:$0xff] }
 0x165   :  { %1573 = vmatmul.mubr.f32.gmra.mxu1 %v1175_v23  ;;  %v1239_v23 = vld [vmem:[%s4273_s3 + $0x3a0] sm:$0xff] }
 0x166   :  { %1798 = vmatmul.mubr.f32.gmra.mxu0 %v1177_v14  ;;  %1577 = vmatprep.mubr.f32.mxu1 %v1180_v41  ;;  %v1241_v14 = vld [vmem:[%s4273_s3 + $0x3b0] sm:$0xff]  ;;  %v1244_v41 = vld [vmem:[%s4273_s3 + $0x3c8] sm:$0xff] }
 0x167   :  { %1802 = vmatprep.mubr.f32.mxu0 %v1182_v55  ;;  %v1246_v55 = vld [vmem:[%s4273_s3 + $0x3d8] sm:$0xff] }
 0x169   :  { %1578 = vmatmul.mubr.f32.gmra.mxu1 %v1179_v4  ;;  %v1243_v4 = vld [vmem:[%s4273_s3 + $0x3c0] sm:$0xff] }
 0x16a   :  { %1803 = vmatmul.mubr.f32.gmra.mxu0 %v1181_v58  ;;  %1582 = vmatprep.mubr.f32.mxu1 %v1184_v27  ;;  %v1245_v58 = vld [vmem:[%s4273_s3 + $0x3d0] sm:$0xff]  ;;  %v1248_v27 = vld [vmem:[%s4273_s3 + $0x3e8] sm:$0xff] }
 0x16b   :  { %1807 = vmatprep.mubr.f32.mxu0 %v1186_v1  ;;  %v1250_v1 = vld [vmem:[%s4273_s3 + $0x3f8] sm:$0xff] }
 0x16d   :  { %1583 = vmatmul.mubr.f32.gmra.mxu1 %v1183_v30  ;;  %v1247_v30 = vld [vmem:[%s4273_s3 + $0x3e0] sm:$0xff] }
 0x16e   :  { %1808 = vmatmul.mubr.f32.gmra.mxu0 %v1185_v39  ;;  %1587 = vmatprep.mubr.f32.mxu1 %v1188_v59  ;;  %v1249_v39 = vld [vmem:[%s4273_s3 + $0x3f0] sm:$0xff]  ;;  %v1286_v59 = vpop.permute.xlu0 %1285  ;;  %s2505_s3 = smov [#allocation3]  }
 0x16f   :  { %1812 = vmatprep.mubr.f32.mxu0 %v1190_v11  ;;  %v3965_v11 = vpop.permute.xlu1 %1290  ;;  %s2238_s20 = sshll.u32 %s2505_s3, 4  ;;  %s2239_s20 = int_to_ptr.vmem [resolvable:$true] %s2238_s20 }
 0x170   :  { %s2481_s4 = scalar_lea.vmem %s2239_s20, 16  ;;  %s2485_s21 = scalar_lea.vmem %s2239_s20, 32 }
 0x171   :  { %1588 = vmatmul.mubr.f32.gmra.mxu1 %v1187_v33  ;;  %p2482_p0 = scmp.ne.s32.totalorder %s2239_s20, %s2481_s4  ;;  %p2486_p1 = scmp.lt.s32.totalorder %s2239_s20, %s2239_s20 }
 0x172   :  { %1813 = vmatmul.mubr.f32.gmra.mxu0 %v1189_v35  ;;  %1592 = vmatprep.mubr.f32.mxu1 %v1192_v20  ;;  %v3967_v33 = vpop.permute.xlu0 %1295  ;;  %p2487_p2 = scmp.lt.s32.totalorder %s2485_s21, %s2481_s4 }
 0x173   :  { %1817 = vmatprep.mubr.f32.mxu0 %v1194_v29  ;;  %v3969_v35 = vpop.permute.xlu1 %1300 }
 0x174   :  { %p2488_p3 = por %p2487_p2, %p2486_p1 }
 0x175   :  { %1593 = vmatmul.mubr.f32.gmra.mxu1 %v1191_v32 }
 0x176   :  { %1818 = vmatmul.mubr.f32.gmra.mxu0 %v1193_v46  ;;  %1597 = vmatprep.mubr.f32.mxu1 %v1196_v36  ;;  %v3971_v20 = vpop.permute.xlu0 %1305  ;;  %p2489_p4 = pnand %p2488_p3, %p2482_p0 }
 0x177   :  { %1822 = vmatprep.mubr.f32.mxu0 %v1198_v57  ;;  %v3973_v29 = vpop.permute.xlu1 %1310 }
 0x179   :  { %1598 = vmatmul.mubr.f32.gmra.mxu1 %v1195_v47 }
 0x17a   :  { %1823 = vmatmul.mubr.f32.gmra.mxu0 %v1197_v8  ;;  %1602 = vmatprep.mubr.f32.mxu1 %v1200_v45  ;;  %v3975_v32 = vpop.permute.xlu0 %1315 }
 0x17b   :  { %1827 = vmatprep.mubr.f32.mxu0 %v1202_v38  ;;  %v3977_v46 = vpop.permute.xlu1 %1320 }
 0x17d   :  { %1603 = vmatmul.mubr.f32.gmra.mxu1 %v1199_v44 }
 0x17e   :  { %1828 = vmatmul.mubr.f32.gmra.mxu0 %v1201_v0  ;;  %1607 = vmatprep.mubr.f32.mxu1 %v1204_v34  ;;  %v3979_v36 = vpop.permute.xlu0 %1325 }
 0x17f   :  { %1832 = vmatprep.mubr.f32.mxu0 %v1206_v61  ;;  %v3981_v57 = vpop.permute.xlu1 %1330 }
 0x181   :  { %1608 = vmatmul.mubr.f32.gmra.mxu1 %v1203_v49 }
 0x182   :  { %1833 = vmatmul.mubr.f32.gmra.mxu0 %v1205_v26  ;;  %1612 = vmatprep.mubr.f32.mxu1 %v1208_v60  ;;  %v3983_v47 = vpop.permute.xlu0 %1335 }
 0x183   :  { %1837 = vmatprep.mubr.f32.mxu0 %v1210_v31  ;;  %v3985_v8 = vpop.permute.xlu1 %1340 }
 0x185   :  { %1613 = vmatmul.mubr.f32.gmra.mxu1 %v1207_v51 }
 0x186   :  { %1838 = vmatmul.mubr.f32.gmra.mxu0 %v1209_v6  ;;  %1617 = vmatprep.mubr.f32.mxu1 %v1212_v9  ;;  %v3987_v45 = vpop.permute.xlu0 %1345 }
 0x187   :  { %1842 = vmatprep.mubr.f32.mxu0 %v1214_v28  ;;  %v3989_v38 = vpop.permute.xlu1 %1350 }
 0x189   :  { %1618 = vmatmul.mubr.f32.gmra.mxu1 %v1211_v3 }
 0x18a   :  { %1843 = vmatmul.mubr.f32.gmra.mxu0 %v1213_v54  ;;  %1622 = vmatprep.mubr.f32.mxu1 %v1216_v52  ;;  %v3991_v44 = vpop.permute.xlu0 %1355 }
 0x18b   :  { %1847 = vmatprep.mubr.f32.mxu0 %v1218_v17  ;;  %v3993_v0 = vpop.permute.xlu1 %1360 }
 0x18d   :  { %1623 = vmatmul.mubr.f32.gmra.mxu1 %v1215_v16 }
 0x18e   :  { %1848 = vmatmul.mubr.f32.gmra.mxu0 %v1217_v63  ;;  %1627 = vmatprep.mubr.f32.mxu1 %v1220_v48  ;;  %v3995_v34 = vpop.permute.xlu0 %1365 }
 0x18f   :  { %1852 = vmatprep.mubr.f32.mxu0 %v1222_v21  ;;  %v3997_v61 = vpop.permute.xlu1 %1370 }
 0x190   :  { %4325 = vst [vmem:[#allocation17_spill] sm:$0xff] %v3997_v61 }
 0x191   :  { %1628 = vmatmul.mubr.f32.gmra.mxu1 %v1219_v18 }
 0x192   :  { %1853 = vmatmul.mubr.f32.gmra.mxu0 %v1221_v13  ;;  %1632 = vmatprep.mubr.f32.mxu1 %v1224_v19  ;;  %v3999_v49 = vpop.permute.xlu0 %1375 }
 0x193   :  { %1857 = vmatprep.mubr.f32.mxu0 %v1226_v53  ;;  %4326 = vst [vmem:[#allocation8_spill] sm:$0xff] %v3999_v49  ;;  %v4001_v26 = vpop.permute.xlu1 %1380 }
 0x194   :  { %4327 = vst [vmem:[#allocation18_spill] sm:$0xff] %v4001_v26 }
 0x195   :  { %1633 = vmatmul.mubr.f32.gmra.mxu1 %v1223_v10 }
 0x196   :  { %1858 = vmatmul.mubr.f32.gmra.mxu0 %v1225_v37  ;;  %1637 = vmatprep.mubr.f32.mxu1 %v1228_v2  ;;  %v4003_v60 = vpop.permute.xlu0 %1385 }
 0x197   :  { %1862 = vmatprep.mubr.f32.mxu0 %v1230_v12  ;;  %4328 = vst [vmem:[#allocation7_spill] sm:$0xff] %v4003_v60  ;;  %v4005_v9 = vpop.permute.xlu1 %1390 }
 0x198   :  { %4329 = vst [vmem:[#allocation11_spill] sm:$0xff] %v4005_v9 }
 0x199   :  { %1638 = vmatmul.mubr.f32.gmra.mxu1 %v1227_v15 }
 0x19a   :  { %1863 = vmatmul.mubr.f32.gmra.mxu0 %v1229_v50  ;;  %1642 = vmatprep.mubr.f32.mxu1 %v1232_v25  ;;  %v4013_v16 = vpop.permute.xlu0 %1395 }
 0x19b   :  { %1867 = vmatprep.mubr.f32.mxu0 %v1234_v62  ;;  %4330 = vst [vmem:[#allocation9_spill] sm:$0xff] %v4013_v16  ;;  %v4015_v21 = vpop.permute.xlu1 %1400 }
 0x19c   :  { %4331 = vst [vmem:[#allocation12_spill] sm:$0xff] %v4015_v21 }
 0x19d   :  { %1643 = vmatmul.mubr.f32.gmra.mxu1 %v1231_v24 }
 0x19e   :  { %1868 = vmatmul.mubr.f32.gmra.mxu0 %v1233_v43  ;;  %1647 = vmatprep.mubr.f32.mxu1 %v1236_v5  ;;  %v4021_v10 = vpop.permute.xlu0 %1405 }
 0x19f   :  { %1872 = vmatprep.mubr.f32.mxu0 %v1238_v42  ;;  %4332 = vst [vmem:[#allocation6_spill] sm:$0xff] %v4021_v10  ;;  %v4027_v12 = vpop.permute.xlu1 %1410 }
 0x1a0   :  { %4333 = vst [vmem:[#allocation14_spill] sm:$0xff] %v4027_v12 }
 0x1a1   :  { %1648 = vmatmul.mubr.f32.gmra.mxu1 %v1235_v56 }
 0x1a2   :  { %1873 = vmatmul.mubr.f32.gmra.mxu0 %v1237_v40  ;;  %1652 = vmatprep.mubr.f32.mxu1 %v1240_v22  ;;  %v4033_v24 = vpop.permute.xlu0 %1415 }
 0x1a3   :  { %1877 = vmatprep.mubr.f32.mxu0 %v1242_v7  ;;  %4334 = vst [vmem:[#allocation10_spill] sm:$0xff] %v4033_v24  ;;  %v4035_v42 = vpop.permute.xlu1 %1420 }
 0x1a4   :  { %4335 = vst [vmem:[#allocation13_spill] sm:$0xff] %v4035_v42 }
 0x1a5   :  { %1653 = vmatmul.mubr.f32.gmra.mxu1 %v1239_v23 }
 0x1a6   :  { %1878 = vmatmul.mubr.f32.gmra.mxu0 %v1241_v14  ;;  %1657 = vmatprep.mubr.f32.mxu1 %v1244_v41  ;;  %v4041_v23 = vpop.permute.xlu0 %1425 }
 0x1a7   :  { %1882 = vmatprep.mubr.f32.mxu0 %v1246_v55  ;;  %4336 = vst [vmem:[#allocation15_spill] sm:$0xff] %v4041_v23  ;;  %v4047_v55 = vpop.permute.xlu1 %1430 }
 0x1a8   :  { %4337 = vst [vmem:[#allocation19_spill] sm:$0xff] %v4047_v55 }
 0x1a9   :  { %1658 = vmatmul.mubr.f32.gmra.mxu1 %v1243_v4 }
 0x1aa   :  { %1883 = vmatmul.mubr.f32.gmra.mxu0 %v1245_v58  ;;  %1662 = vmatprep.mubr.f32.mxu1 %v1248_v27 }
 0x1ab   :  { %1887 = vmatprep.mubr.f32.mxu0 %v1250_v1 }
 0x1ad   :  { %1663 = vmatmul.mubr.f32.gmra.mxu1 %v1247_v30  ;;  %v4053_v30 = vpop.permute.xlu0 %1959 }
 0x1ae   :  { %1888 = vmatmul.mubr.f32.gmra.mxu0 %v1249_v39 }
 0x1f1   :  { %v1509_v31 = vpop.f32.mrf.mxu1 }
 0x1f2   :  { %v1510_v51 = vadd.f32 %v1509_v31, %v1286_v59  ;;  %v1734_v6 = vpop.f32.mrf.mxu0  ;;  %v1965_v31 = vpop.permute.xlu1 %1964 }
 0x1f3   :  { %v1511_v28 = vpop.f32.mrf.mxu1 }
 0x1f4   :  { %v4007_v3 = vadd.f32 %v1734_v6, %v1510_v51  ;;  %v1736_v54 = vpop.f32.mrf.mxu0 }
 0x1f5   :  { %v4009_v52 = vpop.f32.mrf.mxu1 }
 0x1f6   :  { %v4011_v17 = vpop.f32.mrf.mxu0 }
 0x1f7   :  { %v1516_v63 = vpop.f32.mrf.mxu1 }
 0x1f8   :  { %v1741_v48 = vpop.f32.mrf.mxu0  ;;  %v4059_v63 = vpop.permute.xlu0 %1969 }
 0x1f9   :  { %v4017_v18 = vpop.f32.mrf.mxu1 }
 0x1fa   :  { %v4019_v13 = vpop.f32.mrf.mxu0  ;;  %v1520_v9 = vadd.f32 %v4017_v18, %v3967_v33 }
 0x1fb   :  { %v1521_v19 = vpop.f32.mrf.mxu1 }
 0x1fc   :  { %v1746_v53 = vpop.f32.mrf.mxu0 }
 0x1fd   :  { %v4023_v37 = vpop.f32.mrf.mxu1  ;;  %v4065_v53 = vpop.permute.xlu1 %1974 }
 0x1fe   :  { %v4025_v2 = vpop.f32.mrf.mxu0  ;;  %v1525_v26 = vadd.f32 %v4023_v37, %v3969_v35 }
 0x1ff   :  { %v1526_v15 = vpop.f32.mrf.mxu1 }
 0x200   :  { %v1751_v50 = vpop.f32.mrf.mxu0 }
 0x201   :  { %v4029_v25 = vpop.f32.mrf.mxu1 }
 0x202   :  { %v4031_v62 = vpop.f32.mrf.mxu0 }
 0x203   :  { %v1531_v43 = vpop.f32.mrf.mxu1 }
 0x204   :  { %v1756_v5 = vpop.f32.mrf.mxu0 }
 0x205   :  { %v4037_v56 = vpop.f32.mrf.mxu1 }
 0x206   :  { %v4039_v40 = vpop.f32.mrf.mxu0  ;;  %v1535_v35 = vadd.f32 %v4037_v56, %v3973_v29 }
 0x207   :  { %v1536_v22 = vpop.f32.mrf.mxu1 }
 0x208   :  { %v1761_v7 = vpop.f32.mrf.mxu0  ;;  %v4071_v22 = vpop.permute.xlu0 %1979 }
 0x209   :  { %v4043_v14 = vpop.f32.mrf.mxu1 }
 0x20a   :  { %v4045_v41 = vpop.f32.mrf.mxu0 }
 0x20b   :  { %v1541_v4 = vpop.f32.mrf.mxu1 }
 0x20c   :  { %v1766_v58 = vpop.f32.mrf.mxu0  ;;  %v4079_v55 = vpop.permute.xlu0 %1989 }
 0x20d   :  { %v4049_v27 = vpop.f32.mrf.mxu1  ;;  %v4073_v58 = vpop.permute.xlu1 %1984 }
 0x20e   :  { %v4051_v1 = vpop.f32.mrf.mxu0 }
 0x20f   :  { %v1546_v39 = vpop.f32.mrf.mxu1 }
 0x210   :  { %v1771_v59 = vpop.f32.mrf.mxu0  ;;  %v4091_v12 = vpop.permute.xlu0 %1999 }
 0x211   :  { %v4055_v51 = vpop.f32.mrf.mxu1  ;;  %v4085_v23 = vpop.permute.xlu1 %1994 }
 0x212   :  { %v4057_v6 = vpop.f32.mrf.mxu0 }
 0x213   :  { %v1551_v28 = vpop.f32.mrf.mxu1 }
 0x214   :  { %v1776_v54 = vpop.f32.mrf.mxu0  ;;  %v4106_v49 = vpop.permute.xlu0 %2009 }
 0x215   :  { %v4061_v48 = vpop.f32.mrf.mxu1  ;;  %v4095_v21 = vpop.permute.xlu1 %2004 }
 0x216   :  { %v4063_v19 = vpop.f32.mrf.mxu0 }
 0x217   :  { %v1556_v15 = vpop.f32.mrf.mxu1 }
 0x218   :  { %v1781_v50 = vpop.f32.mrf.mxu0 }
 0x219   :  { %v4067_v43 = vpop.f32.mrf.mxu1  ;;  %v4115_v33 = vpop.permute.xlu1 %2014 }
 0x21a   :  { %v4069_v5 = vpop.f32.mrf.mxu0 }
 0x21b   :  { %v1561_v7 = vpop.f32.mrf.mxu1 }
 0x21c   :  { %v1786_v4 = vpop.f32.mrf.mxu0 }
 0x21d   :  { %v4075_v39 = vpop.f32.mrf.mxu1 }
 0x21e   :  { %v4077_v59 = vpop.f32.mrf.mxu0 }
 0x21f   :  { %v1566_v28 = vpop.f32.mrf.mxu1 }
 0x220   :  { %v1791_v54 = vpop.f32.mrf.mxu0  ;;  %v1515_v28 = vadd.f32 %v4009_v52, %v3965_v11  ;;  %v1745_v52 = vadd.f32 %v4019_v13, %v1520_v9 }
 0x221   :  { %v4081_v15 = vpop.f32.mrf.mxu1 }
 0x222   :  { %v4083_v50 = vpop.f32.mrf.mxu0  ;;  %v1740_v60 = vadd.f32 %v4011_v17, %v1515_v28  ;;  %v1750_v17 = vadd.f32 %v4025_v2, %v1525_v26  ;;  %v1893_v28 = vmax.f32 %v4007_v3, 0.0  ;;  %v1895_v9 = vmax.f32 %v1745_v52, 0.0 }
 0x223   :  { %v1571_v42 = vpop.f32.mrf.mxu1  ;;  %v1545_v26 = vadd.f32 %v4049_v27, %v3977_v46  ;;  %v1760_v3 = vadd.f32 %v4039_v40, %v1535_v35  ;;  %v1550_v46 = vadd.f32 %v4055_v51, %v3979_v36  ;;  %v1555_v35 = vadd.f32 %v4061_v48, %v3981_v57 }
 0x224   :  { %v1796_v24 = vpop.f32.mrf.mxu0  ;;  %v1896_v2 = vmax.f32 %v1750_v17, 0.0  ;;  %v1560_v36 = vadd.f32 %v4067_v43, %v3983_v47 }
 0x225   :  { %v4087_v7 = vpop.f32.mrf.mxu1  ;;  %v1770_v40 = vadd.f32 %v4051_v1, %v1545_v26  ;;  %v1898_v17 = vmax.f32 %v1760_v3, 0.0  ;;  %v1780_v43 = vadd.f32 %v4063_v19, %v1555_v35 }
 0x226   :  { %v4089_v4 = vpop.f32.mrf.mxu0 }
 0x227   :  { %v1576_v10 = vpop.f32.mrf.mxu1  ;;  %v1900_v26 = vmax.f32 %v1770_v40, 0.0  ;;  %v2122_v47 = vmul.f32 %v4073_v58, %v1898_v17  ;;  %v1902_v40 = vmax.f32 %v1780_v43, 0.0 }
 0x228   :  { %v1801_v54 = vpop.f32.mrf.mxu0 }
 0x229   :  { %v4097_v16 = vpop.f32.mrf.mxu1  ;;  %v1530_v54 = vadd.f32 %v4029_v25, %v3971_v20  ;;  %v1540_v20 = vadd.f32 %v4043_v14, %v3975_v32  ;;  %v2119_v32 = vmul.f32 %v4059_v63, %v1895_v9 }
 0x22a   :  { %v4101_v42 = vpop.f32.mrf.mxu0 }
 0x22b   :  { %v1581_v24 = vpop.f32.mrf.mxu1  ;;  %v1755_v13 = vadd.f32 %v4031_v62, %v1530_v54  ;;  %v2117_v62 = vmul.f32 %v4053_v30, %v1893_v28  ;;  %v1765_v54 = vadd.f32 %v4045_v41, %v1540_v20  ;;  %v2120_v30 = vmul.f32 %v4065_v53, %v1896_v2 }
 0x22c   :  { %v1806_v10 = vpop.f32.mrf.mxu0  ;;  %v1894_v24 = vmax.f32 %v1740_v60, 0.0  ;;  %v2153_v1 = vsel %vm2149_vm1, %v2119_v32, 0.0  ;;  %v1775_v53 = vadd.f32 %v4057_v6, %v1550_v46  ;;  %v1565_v2 = vadd.f32 %v4075_v39, %v3985_v8 }
 0x22d   :  { %v4108_v11 = vpop.f32.mrf.mxu1  ;;  %v1897_v14 = vmax.f32 %v1755_v13, 0.0  ;;  %v2150_v41 = vsel %vm2149_vm1, %v2117_v62, 0.0  ;;  %v1899_v13 = vmax.f32 %v1765_v54, 0.0  ;;  %v1785_v6 = vadd.f32 %v4069_v5, %v1560_v36 }
 0x22e   :  { %v4113_v61 = vpop.f32.mrf.mxu0  ;;  %v2118_v29 = vmul.f32 %v1965_v31, %v1894_v24  ;;  %v1570_v54 = vadd.f32 %v4081_v15, %v3987_v45  ;;  %v2124_v8 = vmul.f32 %v4085_v23, %v1900_v26  ;;  %v2159_v5 = vsel %vm2149_vm1, %v2122_v47, 0.0 }
 0x22f   :  { %v1586_v18 = vpop.f32.mrf.mxu1  ;;  %v2121_v9 = vmul.f32 %v4071_v22, %v1897_v14  ;;  %v2123_v32 = vmul.f32 %v4079_v55, %v1899_v13  ;;  %v1901_v14 = vmax.f32 %v1775_v53, 0.0  ;;  %v1575_v55 = vadd.f32 %v4087_v7, %v3989_v38 }
 0x230   :  { %v1811_v37 = vpop.f32.mrf.mxu0  ;;  %v4128_v18 = vpop.permute.xlu0 %2019  ;;  %v2151_v24 = vsel %vm2149_vm1, %v2118_v29, 0.0  ;;  %v2155_v29 = vsel %vm2149_vm1, %v2120_v30, 0.0  ;;  %v1903_v15 = vmax.f32 %v1785_v6, 0.0  ;;  %v1795_v23 = vadd.f32 %v4083_v50, %v1570_v54 }
 0x231   :  { %v4121_v10 = vpop.f32.mrf.mxu1  ;;  %v4133_v37 = vpop.permute.xlu1 %2024  ;;  %v2152_v48 = vadd.f32 %v2151_v24, %v2150_v41  ;;  %v2157_v62 = vsel %vm2149_vm1, %v2121_v9, 0.0  ;;  %v2161_v35 = vsel %vm2149_vm1, %v2123_v32, 0.0  ;;  %v1580_v41 = vadd.f32 %v4097_v16, %v3991_v44 }
 0x232   :  { %v4126_v25 = vpop.f32.mrf.mxu0  ;;  %v2163_v38 = vsel %vm2149_vm1, %v2124_v8, 0.0  ;;  %v1800_v13 = vadd.f32 %v4089_v4, %v1575_v55  ;;  %v1585_v53 = vadd.f32 %v4108_v11, %v3993_v0  ;;  %v2127_v44 = vmul.f32 %v4106_v49, %v1903_v15  ;;  %v4338_v0 = vld [vmem:[#allocation17_spill] sm:$0xff] }
 0x233   :  { %v1591_v60 = vpop.f32.mrf.mxu1  ;;  %v2154_v3 = vadd.f32 %v2153_v1, %v2152_v48  ;;  %v2126_v1 = vmul.f32 %v4095_v21, %v1902_v40  ;;  %v1590_v21 = vadd.f32 %v4121_v10, %v3995_v34 }
 0x234   :  { %v1816_v56 = vpop.f32.mrf.mxu0  ;;  %v4149_v28 = vpop.permute.xlu0 %2029  ;;  %v1810_v6 = vadd.f32 %v4113_v61, %v1585_v53  ;;  %v2169_v32 = vsel %vm2149_vm1, %v2127_v44, 0.0  ;;  %v4342_v53 = vld [vmem:[#allocation11_spill] sm:$0xff] }
 0x235   :  { %v4136_v52 = vpop.f32.mrf.mxu1  ;;  %v4161_v57 = vpop.permute.xlu1 %2034  ;;  %v2156_v46 = vadd.f32 %v2155_v29, %v2154_v3  ;;  %v1805_v29 = vadd.f32 %v4101_v42, %v1580_v41  ;;  %v1906_v3 = vmax.f32 %v1800_v13, 0.0  ;;  %v1815_v54 = vadd.f32 %v4126_v25, %v1590_v21  ;;  %v4343_v21 = vld [vmem:[#allocation9_spill] sm:$0xff] }
 0x236   :  { %v4142_v27 = vpop.f32.mrf.mxu0  ;;  %v1595_v11 = vadd.f32 %v4136_v52, %v4338_v0  ;;  %v1908_v55 = vmax.f32 %v1810_v6, 0.0 }
 0x237   :  { %v1596_v31 = vpop.f32.mrf.mxu1  ;;  %v2158_v45 = vadd.f32 %v2157_v62, %v2156_v46  ;;  %v4339_v46 = vld [vmem:[#allocation8_spill] sm:$0xff]  ;;  %v1909_v41 = vmax.f32 %v1815_v54, 0.0 }
 0x238   :  { %v1821_v63 = vpop.f32.mrf.mxu0  ;;  %v4177_v19 = vpop.permute.xlu0 %2039  ;;  %v1790_v31 = vadd.f32 %v4077_v59, %v1565_v2 }
 0x239   :  { %v4154_v51 = vpop.f32.mrf.mxu1  ;;  %v4184_v30 = vpop.permute.xlu1 %2044  ;;  %v2125_v63 = vmul.f32 %v4091_v12, %v1901_v14  ;;  %v2160_v59 = vadd.f32 %v2159_v5, %v2158_v45  ;;  %v1907_v14 = vmax.f32 %v1805_v29, 0.0  ;;  %v1820_v5 = vadd.f32 %v4142_v27, %v1595_v11 }
 0x23a   :  { %v4159_v20 = vpop.f32.mrf.mxu0  ;;  %v1904_v9 = vmax.f32 %v1790_v31, 0.0  ;;  %v1600_v52 = vadd.f32 %v4154_v51, %v4339_v46  ;;  %v2130_v31 = vmul.f32 %v4133_v37, %v1906_v3  ;;  %v4341_v51 = vld [vmem:[#allocation7_spill] sm:$0xff]  ;;  %v4344_v3 = vld [vmem:[#allocation12_spill] sm:$0xff] }
 0x23b   :  { %v1601_v60 = vpop.f32.mrf.mxu1  ;;  %v2162_v50 = vadd.f32 %v2161_v35, %v2160_v59  ;;  %v2165_v26 = vsel %vm2149_vm1, %v2125_v63, 0.0  ;;  %v2131_v27 = vmul.f32 %v4149_v28, %v1907_v14  ;;  %v4345_v14 = vld [vmem:[#allocation6_spill] sm:$0xff] }
 0x23c   :  { %v1826_v22 = vpop.f32.mrf.mxu0  ;;  %v4198_v48 = vpop.permute.xlu0 %2049  ;;  %v1905_v60 = vmax.f32 %v1795_v23, 0.0  ;;  %v2128_v49 = vmul.f32 %v4115_v33, %v1904_v9  ;;  %v1825_v59 = vadd.f32 %v4159_v20, %v1600_v52  ;;  %v2132_v9 = vmul.f32 %v4161_v57, %v1908_v55 }
 0x23d   :  { %v4169_v56 = vpop.f32.mrf.mxu1  ;;  %v4205_v4 = vpop.permute.xlu1 %2054  ;;  %v2164_v43 = vadd.f32 %v2163_v38, %v2162_v50  ;;  %v2167_v22 = vsel %vm2149_vm1, %v2126_v1, 0.0  ;;  %v2177_v20 = vsel %vm2149_vm1, %v2131_v27, 0.0 }
 0x23e   :  { %v4175_v58 = vpop.f32.mrf.mxu0  ;;  %v2129_v10 = vmul.f32 %v4128_v18, %v1905_v60  ;;  %v2171_v40 = vsel %vm2149_vm1, %v2128_v49, 0.0  ;;  %v2133_v60 = vmul.f32 %v4177_v19, %v1909_v41  ;;  %v1911_v29 = vmax.f32 %v1825_v59, 0.0 }
 0x23f   :  { %v1606_v39 = vpop.f32.mrf.mxu1  ;;  %v2166_v42 = vadd.f32 %v2165_v26, %v2164_v43 }
 0x240   :  { %v1831_v24 = vpop.f32.mrf.mxu0  ;;  %v4217_v39 = vpop.permute.xlu0 %2059  ;;  %v2173_v23 = vsel %vm2149_vm1, %v2129_v10, 0.0  ;;  %v2181_v19 = vsel %vm2149_vm1, %v2133_v60, 0.0 }
 0x241   :  { %v1609_v17 = vpop.f32.mrf.mxu1  ;;  %v2168_v33 = vadd.f32 %v2167_v22, %v2166_v42  ;;  %v4340_v24 = vld [vmem:[#allocation18_spill] sm:$0xff]  ;;  %v4224_v25 = vpop.permute.xlu1 %2064 }
 0x242   :  { %v4191_v36 = vpop.f32.mrf.mxu0  ;;  %v1605_v18 = vadd.f32 %v4169_v56, %v4340_v24  ;;  %v1610_v35 = vadd.f32 %v1609_v17, %v4341_v51  ;;  %v2175_v56 = vsel %vm2149_vm1, %v2130_v31, 0.0  ;;  %v4346_v31 = vld [vmem:[#allocation14_spill] sm:$0xff] }
 0x243   :  { %v1611_v7 = vpop.f32.mrf.mxu1  ;;  %v2170_v15 = vadd.f32 %v2169_v32, %v2168_v33 }
 0x244   :  { %v1836_v12 = vpop.f32.mrf.mxu0  ;;  %v1910_v7 = vmax.f32 %v1820_v5, 0.0  ;;  %v1830_v13 = vadd.f32 %v4175_v58, %v1605_v18  ;;  %v2070_v50 = vpop.permute.xlu0 %2069  ;;  %v1835_v28 = vadd.f32 %v4191_v36, %v1610_v35 }
 0x245   :  { %v1614_v16 = vpop.f32.mrf.mxu1  ;;  %v2172_v37 = vadd.f32 %v2171_v40, %v2170_v15  ;;  %v2075_v11 = vpop.permute.xlu1 %2074 }
 0x246   :  { %v1839_v47 = vpop.f32.mrf.mxu0  ;;  %v1615_v17 = vadd.f32 %v1614_v16, %v4342_v53  ;;  %v2134_v58 = vmul.f32 %v4184_v30, %v1910_v7  ;;  %v2179_v16 = vsel %vm2149_vm1, %v2132_v9, 0.0  ;;  %v1912_v22 = vmax.f32 %v1830_v13, 0.0 }
 0x247   :  { %v1616_v2 = vpop.f32.mrf.mxu1  ;;  %v2174_v44 = vadd.f32 %v2173_v23, %v2172_v37  ;;  %v1913_v42 = vmax.f32 %v1835_v28, 0.0 }
 0x248   :  { %v1841_v62 = vpop.f32.mrf.mxu0  ;;  %v1840_v49 = vadd.f32 %v1839_v47, %v1615_v17  ;;  %v2080_v30 = vpop.permute.xlu0 %2079  ;;  %v2183_v33 = vsel %vm2149_vm1, %v2134_v58, 0.0  ;;  %v2136_v47 = vmul.f32 %v4205_v4, %v1912_v22 }
 0x249   :  { %v1619_v34 = vpop.f32.mrf.mxu1  ;;  %v2176_v57 = vadd.f32 %v2175_v56, %v2174_v44  ;;  %v2085_v18 = vpop.permute.xlu1 %2084  ;;  %v4348_v44 = vld [vmem:[#allocation13_spill] sm:$0xff] }
 0x24a   :  { %v1844_v8 = vpop.f32.mrf.mxu0  ;;  %v1620_v43 = vadd.f32 %v1619_v34, %v4343_v21  ;;  %v2135_v34 = vmul.f32 %v4198_v48, %v1911_v29  ;;  %v2137_v48 = vmul.f32 %v4217_v39, %v1913_v42  ;;  %v2187_v4 = vsel %vm2149_vm1, %v2136_v47, 0.0 }
 0x24b   :  { %v1621_v61 = vpop.f32.mrf.mxu1  ;;  %v2178_v62 = vadd.f32 %v2177_v20, %v2176_v57 }
 0x24c   :  { %v1846_v45 = vpop.f32.mrf.mxu0  ;;  %v1845_v10 = vadd.f32 %v1844_v8, %v1620_v43  ;;  %v1914_v61 = vmax.f32 %v1840_v49, 0.0  ;;  %v2185_v15 = vsel %vm2149_vm1, %v2135_v34, 0.0  ;;  %v2090_v56 = vpop.permute.xlu0 %2089  ;;  %v2189_v39 = vsel %vm2149_vm1, %v2137_v48, 0.0  ;;  %v4349_v49 = vld [vmem:[#allocation15_spill] sm:$0xff] }
 0x24d   :  { %v1624_v63 = vpop.f32.mrf.mxu1  ;;  %v2180_v52 = vadd.f32 %v2179_v16, %v2178_v62  ;;  %v1436_v20 = vpop.permute.xlu1 %1435 }
 0x24e   :  { %v1849_v38 = vpop.f32.mrf.mxu0  ;;  %v1625_v36 = vadd.f32 %v1624_v63, %v4344_v3  ;;  %v1915_v51 = vmax.f32 %v1845_v10, 0.0  ;;  %v4347_v63 = vld [vmem:[#allocation10_spill] sm:$0xff] }
 0x24f   :  { %v1626_v1 = vpop.f32.mrf.mxu1  ;;  %v2182_v45 = vadd.f32 %v2181_v19, %v2180_v52 }
 0x250   :  { %v1851_v12 = vpop.f32.mrf.mxu0  ;;  %v1850_v40 = vadd.f32 %v1849_v38, %v1625_v36  ;;  %v2138_v38 = vmul.f32 %v4224_v25, %v1914_v61  ;;  %v2139_v53 = vmul.f32 %v2070_v50, %v1915_v51 }
 0x251   :  { %v1629_v26 = vpop.f32.mrf.mxu1  ;;  %v2184_v41 = vadd.f32 %v2183_v33, %v2182_v45 }
 0x252   :  { %v1854_v0 = vpop.f32.mrf.mxu0  ;;  %v1630_v54 = vadd.f32 %v1629_v26, %v4345_v14  ;;  %v1916_v37 = vmax.f32 %v1850_v40, 0.0  ;;  %v2191_v21 = vsel %vm2149_vm1, %v2138_v38, 0.0  ;;  %v2193_v16 = vsel %vm2149_vm1, %v2139_v53, 0.0  ;;  %v1441_v14 = vpop.permute.xlu1 %1440 }
 0x253   :  { %v1631_v2 = vpop.f32.mrf.mxu1  ;;  %v2186_v9 = vadd.f32 %v2185_v15, %v2184_v41 }
 0x254   :  { %v1856_v6 = vpop.f32.mrf.mxu0  ;;  %v1855_v35 = vadd.f32 %v1854_v0, %v1630_v54  ;;  %v2140_v25 = vmul.f32 %v2075_v11, %v1916_v37 }
 0x255   :  { %v1634_v32 = vpop.f32.mrf.mxu1  ;;  %v2188_v60 = vadd.f32 %v2187_v4, %v2186_v9  ;;  %v2095_v6 = vpop.permute.xlu0 %2094 }
 0x256   :  { %v1859_v46 = vpop.f32.mrf.mxu0  ;;  %v1635_v55 = vadd.f32 %v1634_v32, %v4346_v31  ;;  %v1917_v17 = vmax.f32 %v1855_v35, 0.0  ;;  %v2195_v32 = vsel %vm2149_vm1, %v2140_v25, 0.0  ;;  %v2105_v41 = vpop.permute.xlu1 %2104 }
 0x257   :  { %v1636_v5 = vpop.f32.mrf.mxu1  ;;  %v2190_v58 = vadd.f32 %v2189_v39, %v2188_v60 }
 0x258   :  { %v1861_v24 = vpop.f32.mrf.mxu0  ;;  %v1860_v7 = vadd.f32 %v1859_v46, %v1635_v55  ;;  %v2141_v22 = vmul.f32 %v2080_v30, %v1917_v17  ;;  %v4350_v5 = vld [vmem:[#allocation19_spill] sm:$0xff] }
 0x259   :  { %v1639_v8 = vpop.f32.mrf.mxu1  ;;  %v2192_v62 = vadd.f32 %v2191_v21, %v2190_v58  ;;  %v2100_v48 = vpop.permute.xlu0 %2099 }
 0x25a   :  { %v1640_v23 = vadd.f32 %v1639_v8, %v4347_v63  ;;  %v1864_v27 = vpop.f32.mrf.mxu0  ;;  %v1918_v43 = vmax.f32 %v1860_v7, 0.0  ;;  %v2197_v52 = vsel %vm2149_vm1, %v2141_v22, 0.0  ;;  %v2225_v22 = vlaneseq }
 0x25b   :  { %v1641_v59 = vpop.f32.mrf.mxu1  ;;  %v2194_v54 = vadd.f32 %v2193_v16, %v2192_v62 }
 0x25c   :  { %v1866_v1 = vpop.f32.mrf.mxu0  ;;  %v1865_v12 = vadd.f32 %v1864_v27, %v1640_v23  ;;  %v2142_v19 = vmul.f32 %v2085_v18, %v1918_v43 }
 0x25d   :  { %v1644_v13 = vpop.f32.mrf.mxu1  ;;  %v2196_v40 = vadd.f32 %v2195_v32, %v2194_v54 }
 0x25e   :  { %v1645_v28 = vadd.f32 %v1644_v13, %v4348_v44  ;;  %v1869_v26 = vpop.f32.mrf.mxu0  ;;  %v1919_v50 = vmax.f32 %v1865_v12, 0.0  ;;  %v2199_v55 = vsel %vm2149_vm1, %v2142_v19, 0.0  ;;  %v2110_v12 = vpop.permute.xlu0 %2109 }
 0x25f   :  { %v1646_v29 = vpop.f32.mrf.mxu1  ;;  %v2198_v8 = vadd.f32 %v2197_v52, %v2196_v40 }
 0x260   :  { %v1870_v0 = vadd.f32 %v1869_v26, %v1645_v28  ;;  %v1871_v57 = vpop.f32.mrf.mxu0  ;;  %v2143_v33 = vmul.f32 %v2090_v56, %v1919_v50 }
 0x261   :  { %v1649_v2 = vpop.f32.mrf.mxu1  ;;  %v2200_v59 = vadd.f32 %v2199_v55, %v2198_v8 }
 0x262   :  { %v1650_v3 = vadd.f32 %v1649_v2, %v4349_v49  ;;  %v1874_v36 = vpop.f32.mrf.mxu0  ;;  %v1920_v34 = vmax.f32 %v1870_v0, 0.0  ;;  %v2201_v51 = vsel %vm2149_vm1, %v2143_v33, 0.0  ;;  %v2115_v0 = vpop.permute.xlu1 %2114 }
 0x263   :  { %v1651_v42 = vpop.f32.mrf.mxu1  ;;  %v2202_v56 = vadd.f32 %v2201_v51, %v2200_v59  ;;  %v2223_v32 = vpop.permute.xlu0 %2222 }
 0x264   :  { %v1875_v11 = vadd.f32 %v1874_v36, %v1650_v3  ;;  %v1876_v10 = vpop.f32.mrf.mxu0  ;;  %v2144_v24 = vmul.f32 %v2095_v6, %v1920_v34  ;;  %v2226_v3 = vshrl.u32 %v2225_v22, 7 }
 0x265   :  { %v1654_v46 = vpop.f32.mrf.mxu1 }
 0x266   :  { %v1921_v30 = vmax.f32 %v1875_v11, 0.0  ;;  %v1655_v47 = vadd.f32 %v1654_v46, %v4350_v5  ;;  %v1879_v61 = vpop.f32.mrf.mxu0  ;;  %v2203_v38 = vsel %vm2149_vm1, %v2144_v24, 0.0  ;;  %v2227_v62 = vsub.s32 0, %v2226_v3 }
 0x267   :  { %v1656_v31 = vpop.f32.mrf.mxu1  ;;  %v2204_v44 = vadd.f32 %v2203_v38, %v2202_v56 }
 0x268   :  { %v1880_v45 = vadd.f32 %v1879_v61, %v1655_v47  ;;  %v1881_v18 = vpop.f32.mrf.mxu0  ;;  %v2145_v35 = vmul.f32 %v2100_v48, %v1921_v30  ;;  %v2228_v34 = vrot.slane %v2223_v32, %v2227_v62 }
 0x269   :  { %v1659_v15 = vpop.f32.mrf.mxu1 }
 0x26a   :  { %v1922_v63 = vmax.f32 %v1880_v45, 0.0  ;;  %v1660_v23 = vadd.f32 %v1659_v15, %v1436_v20  ;;  %v1884_v27 = vpop.f32.mrf.mxu0  ;;  %v2205_v39 = vsel %vm2149_vm1, %v2145_v35, 0.0 }
 0x26b   :  { %v1661_v4 = vpop.f32.mrf.mxu1  ;;  %v2206_v21 = vadd.f32 %v2205_v39, %v2204_v44 }
 0x26c   :  { %v2146_v37 = vmul.f32 %v2105_v41, %v1922_v63  ;;  %v1885_v7 = vadd.f32 %v1884_v27, %v1660_v23  ;;  %v1886_v1 = vpop.f32.mrf.mxu0 }
 0x26d   :  { %v1664_v9 = vpop.f32.mrf.mxu1 }
 0x26e   :  { %v1923_v13 = vmax.f32 %v1885_v7, 0.0  ;;  %v1665_v53 = vadd.f32 %v1664_v9, %v1441_v14  ;;  %v1889_v17 = vpop.f32.mrf.mxu0  ;;  %v2207_v26 = vsel %vm2149_vm1, %v2146_v37, 0.0 }
 0x26f   :  { %v1666_v28 = vpop.f32.mrf.mxu1  ;;  %v2208_v57 = vadd.f32 %v2207_v26, %v2206_v21 }
 0x270   :  { %v2147_v20 = vmul.f32 %v2110_v12, %v1923_v13  ;;  %v1890_v60 = vadd.f32 %v1889_v17, %v1665_v53  ;;  %v1891_v29 = vpop.f32.mrf.mxu0 }
 0x272   :  { %v2209_v25 = vsel %vm2149_vm1, %v2147_v20, 0.0  ;;  %v1924_v43 = vmax.f32 %v1890_v60, 0.0 }
 0x273   :  { %v2210_v2 = vadd.f32 %v2209_v25, %v2208_v57 }
 0x274   :  { %v2148_v58 = vmul.f32 %v2115_v0, %v1924_v43 }
 0x276   :  { %v2211_v16 = vsel %vm2149_vm1, %v2148_v58, 0.0 }
 0x277   :  { %v2212_v50 = vadd.f32 %v2211_v16, %v2210_v2 }
 0x279   :  { %v2213_v49 = vrot.slane %v2212_v50, 4 }
 0x27b   :  { %v2214_v36 = vadd.f32 %v2213_v49, %v2212_v50 }
 0x27d   :  { %v2215_v6 = vrot.slane %v2214_v36, 2 }
 0x27f   :  { %v2216_v42 = vadd.f32 %v2215_v6, %v2214_v36 }
 0x281   :  { %v2217_v19 = vrot.slane %v2216_v42, 1 }
 0x283   :  { %v2218_v11 = vadd.f32 %v2217_v19, %v2216_v42 }
 0x285   :  { %v2229_v10 = vadd.f32 %v2228_v34, %v2218_v11 }
 0x287   :  { %2231 = vst.msk [vmem:[#allocation3] sm:$0x1] %vm2230_vm2, %v2229_v10 }
 0x288   :  { %2492 = shalt.err (!%p2489_p4)
}
 0x289   :  { %2241 = dma.vmem_to_hbm [thread:$0]  %s2239_s20, 16, %s4277_s7, [#allocation4]  }
 0x28a   :  { %2501 = dma.done.wait [#allocation4], 16  }
 0x28b   :  { %2502 = vsyncadd [#allocation4], 4294967280 }
 0x28c   :  { %2245 = vsyncpa [#allocation4], 1 }

</bundles_post_ra>
